<compile_context>
chip_gen: v6e
topology: v6e:2x2x1
jax: 0.10.0
libtpu: 0.0.40
codegen_flags: <defaults>
</compile_context>

<pallas_src>
import math

import numpy as np
import jax
import jax.numpy as jnp
from jax.experimental import pallas as pl
from jax.experimental.pallas import tpu as pltpu


# ----------------------------- host-side constant tables -----------------------------
def _build_masks_and_selector(H, W, BB):
    """Border masks for the 3x3 taps (full-res and pooled-res) and the per-image avg-pool selector."""
    HW = H * W
    HP, WP = H // 2, W // 2
    m = np.arange(HW)
    y, x = m // W, m % W
    yo, xo = y // 2, x // 2
    mf = np.zeros((9, HW), np.float32)   # conv1/conv2 taps (16x16 grid)
    mp = np.zeros((9, HW), np.float32)   # conv3 taps (8x8 pooled grid embedded at even-even lanes)
    for t in range(9):
        dy, dx = t // 3, t % 3
        mf[t] = ((y + dy - 1 >= 0) & (y + dy - 1 < H) &
                 (x + dx - 1 >= 0) & (x + dx - 1 < W))
        mp[t] = ((yo + dy - 1 >= 0) & (yo + dy - 1 < HP) &
                 (xo + dx - 1 >= 0) & (xo + dx - 1 < WP))
    mask_full = np.tile(mf, (1, BB))                       # (9, BB*HW)
    mask_pool = np.tile(mp, (1, BB))                       # (9, BB*HW)
    # selector: p[c, b] = sum_m a3[c, m] * sel[m, b]  ==  mean over the 64 valid pooled lanes of image b
    valid = ((y % 2 == 0) & (x % 2 == 0)).astype(np.float32) / float(HP * WP)
    sel = np.zeros((BB * HW, BB), np.float32)
    for b in range(BB):
        sel[b * HW:(b + 1) * HW, b] = valid
    return jnp.asarray(mask_full), jnp.asarray(mask_pool), jnp.asarray(sel)


# ----------------------------- fused forward kernel -----------------------------
def fused_forward(x_flat, params, B, H, W, block_b):
    convs = params["convs"]
    w1, t1 = convs[0]["w"], convs[0]["shift"]
    w2, t2 = convs[1]["w"], convs[1]["shift"]
    w3, t3 = convs[2]["w"], convs[2]["shift"]
    C0 = x_flat.shape[0]
    C1, C2, C3 = w1.shape[0], w2.shape[0], w3.shape[0]
    aw1, aw2 = params["att_w1"], params["att_w2"]
    fw1, fb1, fw2, fb2 = params["fc1_w"], params["fc1_b"], params["fc2_w"], params["fc2_b"]
    NC = fw2.shape[0]

    HW = H * W
    BB = block_b
    NBLK = pl.cdiv(B, BB)
    Bpad = NBLK * BB
    M = BB * HW                                   # GEMM lane dimension (spatial + folded batch)
    HALO = ((2 * (W + 1) + 127) // 128) * 128     # 128-aligned halo so interior stores are vreg aligned
    HM = M + 2 * HALO

    if Bpad != B:                                  # pad batch to a multiple of the batch block
        x_flat = jnp.pad(x_flat, ((0, 0), (0, (Bpad - B) * HW)))

    mask_full, mask_pool, selT = _build_masks_and_selector(H, W, BB)

    def kernel(x_ref, mfull_ref, mpool_ref, sel_ref,
               w1_ref, t1_ref, w2_ref, t2_ref, w3_ref, t3_ref,
               aw1_ref, aw2_ref, fw1_ref, fb1_ref, fw2_ref, fb2_ref,
               o_ref,
               halo0, halo1, halo2, halo3, col1, col2, col3):

        def fill_halo(dst, interior):
            # zero ONLY the two aligned halo strips, then one full-lane interior store
            c = dst.shape[0]
            dst[:, 0:HALO] = jnp.zeros((c, HALO), jnp.float32)
            dst[:, HALO + M:HALO + M + HALO] = jnp.zeros((c, HALO), jnp.float32)
            dst[:, HALO:HALO + M] = interior

        def im2col(src, col, cin, mask_ref, step):
            # col[t*cin:(t+1)*cin, :] = shift(src, step*((dy-1)*W+(dx-1))) * border_mask[t]
            for t in range(9):
                dy, dx = t // 3, t % 3
                off = step * ((dy - 1) * W + (dx - 1))
                slab = src[:, HALO + off:HALO + off + M]          # (cin, M) static lane-offset slice
                if t != 4:                                        # center tap needs no mask
                    slab = slab * mask_ref[t:t + 1, :]
                col[t * cin:(t + 1) * cin, :] = slab.astype(jnp.bfloat16)

        def conv(col, w_ref, t_ref):
            # ONE GEMM per conv: (Cout, 9*Cin) x (9*Cin, M), f32 accumulate; folded-BN shift + ReLU
            y = jnp.dot(w_ref[...], col[...], preferred_element_type=jnp.float32)
            return jnp.maximum(y + t_ref[...], 0.0)

        # ---- conv1 (4 -> 8) ----
        fill_halo(halo0, x_ref[...])
        im2col(halo0, col1, C0, mfull_ref, 1)
        a1 = conv(col1, w1_ref, t1_ref)                           # (C1, M)

        # ---- conv2 (8 -> 16) ----
        fill_halo(halo1, a1)
        im2col(halo1, col2, C1, mfull_ref, 1)
        a2 = conv(col2, w2_ref, t2_ref)                           # (C2, M)

        # ---- MaxPool2d(2,2), vectorized; pooled values live at even-(y,x) lanes ----
        fill_halo(halo2, a2)
        s01 = halo2[:, HALO + 1:HALO + 1 + M]
        s10 = halo2[:, HALO + W:HALO + W + M]
        s11 = halo2[:, HALO + W + 1:HALO + W + 1 + M]
        pooled = jnp.maximum(jnp.maximum(a2, s01), jnp.maximum(s10, s11))

        # ---- conv3 (16 -> 32) on the pooled map (embedded at stride 2 => doubled tap offsets) ----
        fill_halo(halo3, pooled)
        im2col(halo3, col3, C2, mpool_ref, 2)
        a3 = conv(col3, w3_ref, t3_ref)                           # (C3, M) valid at even-even lanes

        # ---- AdaptiveAvgPool2d(1): per-image masked mean over the 64 valid pooled lanes (one dot) ----
        p = jnp.dot(a3, sel_ref[...], preferred_element_type=jnp.float32)   # (C3, BB)

        # ---- ChannelAttention (SE): avg_pool(x * gate) == avg_pool(x) * gate ----
        h = jnp.maximum(jnp.dot(aw1_ref[...], p.astype(jnp.bfloat16),
                                preferred_element_type=jnp.float32), 0.0)    # (hid, BB)
        z = jnp.dot(aw2_ref[...], h.astype(jnp.bfloat16),
                    preferred_element_type=jnp.float32)                      # (C3, BB)
        gate = 1.0 / (1.0 + jnp.exp(-z))                                     # exact sigmoid
        feats = p * gate                                                     # (C3, BB)

        # ---- classifier (Dropout = identity at inference) ----
        h1 = jnp.maximum(jnp.dot(fw1_ref[...], feats.astype(jnp.bfloat16),
                                 preferred_element_type=jnp.float32) + fb1_ref[...], 0.0)
        logits = jnp.dot(fw2_ref[...], h1.astype(jnp.bfloat16),
                         preferred_element_type=jnp.float32) + fb2_ref[...]  # (NC, BB)
        o_ref[0] = logits

    def cspec(a):  # constant operand: whole array every grid step
        nd = a.ndim
        return pl.BlockSpec(a.shape, lambda i, _n=nd: (0,) * _n)

    out = pl.pallas_call(
        kernel,
        out_shape=jax.ShapeDtypeStruct((NBLK, NC, BB), jnp.float32),
        grid=(NBLK,),
        in_specs=[pl.BlockSpec((C0, M), lambda i: (0, i)),
                  cspec(mask_full), cspec(mask_pool), cspec(selT),
                  cspec(w1), cspec(t1), cspec(w2), cspec(t2), cspec(w3), cspec(t3),
                  cspec(aw1), cspec(aw2),
                  cspec(fw1), cspec(fb1), cspec(fw2), cspec(fb2)],
        out_specs=pl.BlockSpec((1, NC, BB), lambda i: (i, 0, 0)),
        scratch_shapes=[
            pltpu.VMEM((C0, HM), jnp.float32),        # input + halo
            pltpu.VMEM((C1, HM), jnp.float32),        # conv1 act + halo
            pltpu.VMEM((C2, HM), jnp.float32),        # conv2 act + halo
            pltpu.VMEM((C2, HM), jnp.float32),        # pooled map + halo
            pltpu.VMEM((9 * C0, M), jnp.bfloat16),    # im2col^T for conv1
            pltpu.VMEM((9 * C1, M), jnp.bfloat16),    # im2col^T for conv2
            pltpu.VMEM((9 * C2, M), jnp.bfloat16),    # im2col^T for conv3
        ],
        compiler_params=pltpu.CompilerParams(
            dimension_semantics=("parallel",),         # batch-block axis -> both TCs on v7x / megacore
            vmem_limit_bytes=32 * 1024 * 1024),
    )(x_flat, mask_full, mask_pool, selT,
      w1, t1, w2, t2, w3, t3, aw1, aw2, fw1, fb1, fw2, fb2)

    # (NBLK, NC, BB) -> (Bpad, NC) -> (B, NC)
    return out.transpose(0, 2, 1).reshape(Bpad, NC)[:B]


def forward(params, x_nchw, block_b=None):
    B, C, H, W = x_nchw.shape
    assert H % 2 == 0 and W % 2 == 0
    if block_b is None:
        # keep grid length >= 2 when B >= 2 (v7x has 2 TensorCores); grow BB with the batch otherwise
        block_b = 1 if B <= 2 else min(8, max(1, B // 2))
    # (B, C, H, W) -> (C, B*H*W): channels in sublanes, spatial(+batch) in lanes
    x_flat = jnp.transpose(x_nchw.astype(jnp.float32), (1, 0, 2, 3)).reshape(C, B * H * W)
    return fused_forward(x_flat, params, B, H, W, block_b)


# -------------------------------- parameters --------------------------------
def init_params(key, input_channels, num_classes, layer_widths):
    eps = 1e-5
    keys = jax.random.split(key, len(layer_widths) + 4)
    convs = []
    cin = input_channels
    for i, cout in enumerate(layer_widths):
        std = math.sqrt(2.0 / (cout * 9))                       # kaiming_normal, fan_out, relu
        w = std * jax.random.normal(keys[i], (cout, cin, 3, 3), jnp.float32)   # PyTorch OIHW layout
        # BatchNorm eval fold (fresh init: gamma=1, beta=0, running_mean=0, running_var=1)
        gamma = jnp.ones((cout,), jnp.float32)
        beta = jnp.zeros((cout,), jnp.float32)
        mean = jnp.zeros((cout,), jnp.float32)
        var = jnp.ones((cout,), jnp.float32)
        scale = gamma / jnp.sqrt(var + eps)
        shift = beta - mean * scale
        w_folded = w * scale[:, None, None, None]               # fold BN scale into the conv weight
        # (Cout, Cin, 3, 3) -> (Cout, 9*Cin) with rows blocked by tap t = dy*3+dx (matches im2col^T)
        w9 = jnp.transpose(w_folded, (0, 2, 3, 1)).reshape(cout, 9 * cin)
        convs.append(dict(w=w9.astype(jnp.bfloat16),
                          shift=shift.reshape(cout, 1).astype(jnp.float32)))
        cin = cout

    C = layer_widths[-1]
    hid_att = max(1, C // 16)                                   # ChannelAttention reduction=16
    hdim = max(128, num_classes * 8)

    def xavier(k, out_dim, in_dim):                             # xavier_normal_, PyTorch (out, in) layout
        return math.sqrt(2.0 / (in_dim + out_dim)) * jax.random.normal(k, (out_dim, in_dim), jnp.float32)

    return dict(
        convs=convs,
        att_w1=xavier(keys[-4], hid_att, C).astype(jnp.bfloat16),   # bias=False (per spec)
        att_w2=xavier(keys[-3], C, hid_att).astype(jnp.bfloat16),   # bias=False (per spec)
        fc1_w=xavier(keys[-2], hdim, C).astype(jnp.bfloat16),
        fc1_b=jnp.zeros((hdim, 1), jnp.float32),
        fc2_w=xavier(keys[-1], num_classes, hdim).astype(jnp.bfloat16),
        fc2_b=jnp.zeros((num_classes, 1), jnp.float32),
    )


# ----------------------------- pure-JAX reference (f32) -----------------------------
def reference_forward(params, x_nchw):
    def conv_bn_relu(x, c):
        cout = c["w"].shape[0]
        cin = c["w"].shape[1] // 9
        w = c["w"].astype(jnp.float32).reshape(cout, 3, 3, cin).transpose(0, 3, 1, 2)  # OIHW
        y = jax.lax.conv_general_dilated(x, w, (1, 1), ((1, 1), (1, 1)),
                                         dimension_numbers=("NCHW", "OIHW", "NCHW"))
        return jnp.maximum(y + c["shift"].reshape(1, cout, 1, 1), 0.0)

    x = conv_bn_relu(x_nchw.astype(jnp.float32), params["convs"][0])
    x = conv_bn_relu(x, params["convs"][1])
    x = jax.lax.reduce_window(x, -jnp.inf, jax.lax.max, (1, 1, 2, 2), (1, 1, 2, 2), "VALID")
    x = conv_bn_relu(x, params["convs"][2])
    p = jnp.mean(x, axis=(2, 3))                                                  # (B, C3)
    h = jnp.maximum(p @ params["att_w1"].astype(jnp.float32).T, 0.0)
    gate = jax.nn.sigmoid(h @ params["att_w2"].astype(jnp.float32).T)
    feats = p * gate
    h1 = jnp.maximum(feats @ params["fc1_w"].astype(jnp.float32).T
                     + params["fc1_b"].reshape(1, -1), 0.0)
    return h1 @ params["fc2_w"].astype(jnp.float32).T + params["fc2_b"].reshape(1, -1)


# ----------------------------------- main -----------------------------------
if __name__ == "__main__":
    key = jax.random.PRNGKey(0)
    kx, kp = jax.random.split(key)
    B, Cin, H, W = 2, 4, 16, 16
    num_classes = 10
    layer_widths = [8, 16, 32]

    x = jax.random.normal(kx, (B, Cin, H, W), jnp.float32)     # NCHW, like the PyTorch module
    params = init_params(kp, Cin, num_classes, layer_widths)

    fwd = jax.jit(forward)
    out = jax.block_until_ready(fwd(params, x))
    assert out.shape == (B, num_classes), out.shape
    assert bool(jnp.all(jnp.isfinite(out)))

    ref = reference_forward(params, x)
    err = float(jnp.max(jnp.abs(out - ref)))
    assert err < 3e-2, f"kernel vs reference max abs diff {err}"

    print("KERNEL_OK")
</pallas_src>

<mosaic_0001>
module attributes {stable_mosaic.version = 11 : i64} {
  func.func @kernel(%arg0: i32, %arg1: memref<4x256xf32, #tpu.memory_space<vmem>>, %arg2: memref<9x256xf32, #tpu.memory_space<vmem>>, %arg3: memref<9x256xf32, #tpu.memory_space<vmem>>, %arg4: memref<256x1xf32, #tpu.memory_space<vmem>>, %arg5: memref<8x36xbf16, #tpu.memory_space<vmem>>, %arg6: memref<8x1xf32, #tpu.memory_space<vmem>>, %arg7: memref<16x72xbf16, #tpu.memory_space<vmem>>, %arg8: memref<16x1xf32, #tpu.memory_space<vmem>>, %arg9: memref<32x144xbf16, #tpu.memory_space<vmem>>, %arg10: memref<32x1xf32, #tpu.memory_space<vmem>>, %arg11: memref<2x32xbf16, #tpu.memory_space<vmem>>, %arg12: memref<32x2xbf16, #tpu.memory_space<vmem>>, %arg13: memref<128x32xbf16, #tpu.memory_space<vmem>>, %arg14: memref<128x1xf32, #tpu.memory_space<vmem>>, %arg15: memref<10x128xbf16, #tpu.memory_space<vmem>>, %arg16: memref<10x1xf32, #tpu.memory_space<vmem>>, %arg17: memref<1x10x1xf32, #tpu.memory_space<vmem>>, %arg18: memref<4x512xf32, #tpu.memory_space<vmem>>, %arg19: memref<8x512xf32, #tpu.memory_space<vmem>>, %arg20: memref<16x512xf32, #tpu.memory_space<vmem>>, %arg21: memref<16x512xf32, #tpu.memory_space<vmem>>, %arg22: memref<36x256xbf16, #tpu.memory_space<vmem>>, %arg23: memref<72x256xbf16, #tpu.memory_space<vmem>>, %arg24: memref<144x256xbf16, #tpu.memory_space<vmem>>) attributes {dimension_semantics = [#tpu.dimension_semantics<parallel>], iteration_bounds = array<i64: 2>, scalar_prefetch = 0 : i64, scratch_operands = 7 : i64, tpu.core_type = #tpu.core_type<tc>, window_params = [{transform_indices = @transform_0, window_bounds = array<i64: 4, 256>}, {pipeline_mode = #tpu.pipeline_mode<synchronous>, transform_indices = @transform_1, window_bounds = array<i64: 9, 256>}, {pipeline_mode = #tpu.pipeline_mode<synchronous>, transform_indices = @transform_2, window_bounds = array<i64: 9, 256>}, {pipeline_mode = #tpu.pipeline_mode<synchronous>, transform_indices = @transform_3, window_bounds = array<i64: 256, 1>}, {pipeline_mode = #tpu.pipeline_mode<synchronous>, transform_indices = @transform_4, window_bounds = array<i64: 8, 36>}, {pipeline_mode = #tpu.pipeline_mode<synchronous>, transform_indices = @transform_5, window_bounds = array<i64: 8, 1>}, {pipeline_mode = #tpu.pipeline_mode<synchronous>, transform_indices = @transform_6, window_bounds = array<i64: 16, 72>}, {pipeline_mode = #tpu.pipeline_mode<synchronous>, transform_indices = @transform_7, window_bounds = array<i64: 16, 1>}, {pipeline_mode = #tpu.pipeline_mode<synchronous>, transform_indices = @transform_8, window_bounds = array<i64: 32, 144>}, {pipeline_mode = #tpu.pipeline_mode<synchronous>, transform_indices = @transform_9, window_bounds = array<i64: 32, 1>}, {pipeline_mode = #tpu.pipeline_mode<synchronous>, transform_indices = @transform_10, window_bounds = array<i64: 2, 32>}, {pipeline_mode = #tpu.pipeline_mode<synchronous>, transform_indices = @transform_11, window_bounds = array<i64: 32, 2>}, {pipeline_mode = #tpu.pipeline_mode<synchronous>, transform_indices = @transform_12, window_bounds = array<i64: 128, 32>}, {pipeline_mode = #tpu.pipeline_mode<synchronous>, transform_indices = @transform_13, window_bounds = array<i64: 128, 1>}, {pipeline_mode = #tpu.pipeline_mode<synchronous>, transform_indices = @transform_14, window_bounds = array<i64: 10, 128>}, {pipeline_mode = #tpu.pipeline_mode<synchronous>, transform_indices = @transform_15, window_bounds = array<i64: 10, 1>}, {transform_indices = @transform_16, window_bounds = array<i64: 1, 10, 1>}]} {
    %c0 = arith.constant 0 : index
    %c0_0 = arith.constant 0 : index
    %0 = vector.load %arg1[%c0, %c0_0] : memref<4x256xf32, #tpu.memory_space<vmem>>, vector<4x256xf32>
    %cst = arith.constant 0.000000e+00 : f32
    %1 = vector.broadcast %cst : f32 to vector<4x128xf32>
    %c0_1 = arith.constant 0 : index
    %c0_2 = arith.constant 0 : index
    %2 = vector.load %arg18[%c0_1, %c0_2] : memref<4x512xf32, #tpu.memory_space<vmem>>, vector<4x128xf32>
    tpu.vector_store %arg18[%c0_1, %c0_2], %1 {strides = array<i32>} : memref<4x512xf32, #tpu.memory_space<vmem>>, vector<4x128xf32>,
    %cst_3 = arith.constant 0.000000e+00 : f32
    %3 = vector.broadcast %cst_3 : f32 to vector<4x128xf32>
    %c0_4 = arith.constant 0 : index
    %c384 = arith.constant 384 : index
    %4 = vector.load %arg18[%c0_4, %c384] : memref<4x512xf32, #tpu.memory_space<vmem>>, vector<4x128xf32>
    tpu.vector_store %arg18[%c0_4, %c384], %3 {strides = array<i32>} : memref<4x512xf32, #tpu.memory_space<vmem>>, vector<4x128xf32>,
    %c0_5 = arith.constant 0 : index
    %c128 = arith.constant 128 : index
    %5 = vector.load %arg18[%c0_5, %c128] : memref<4x512xf32, #tpu.memory_space<vmem>>, vector<4x256xf32>
    tpu.vector_store %arg18[%c0_5, %c128], %0 {strides = array<i32>} : memref<4x512xf32, #tpu.memory_space<vmem>>, vector<4x256xf32>,
    %c0_6 = arith.constant 0 : index
    %c111 = arith.constant 111 : index
    %6 = vector.load %arg18[%c0_6, %c111] : memref<4x512xf32, #tpu.memory_space<vmem>>, vector<4x256xf32>
    %c0_7 = arith.constant 0 : index
    %c0_8 = arith.constant 0 : index
    %7 = vector.load %arg2[%c0_7, %c0_8] : memref<9x256xf32, #tpu.memory_space<vmem>>, vector<1x256xf32>
    %8 = vector.broadcast %7 : vector<1x256xf32> to vector<4x256xf32>
    %9 = arith.mulf %6, %8 : vector<4x256xf32>
    %10 = arith.truncf %9 : vector<4x256xf32> to vector<4x256xbf16>
    %c0_9 = arith.constant 0 : index
    %c0_10 = arith.constant 0 : index
    %11 = vector.load %arg22[%c0_9, %c0_10] : memref<36x256xbf16, #tpu.memory_space<vmem>>, vector<4x256xbf16>
    tpu.vector_store %arg22[%c0_9, %c0_10], %10 {strides = array<i32>} : memref<36x256xbf16, #tpu.memory_space<vmem>>, vector<4x256xbf16>,
    %c0_11 = arith.constant 0 : index
    %c112 = arith.constant 112 : index
    %12 = vector.load %arg18[%c0_11, %c112] : memref<4x512xf32, #tpu.memory_space<vmem>>, vector<4x256xf32>
    %c1 = arith.constant 1 : index
    %c0_12 = arith.constant 0 : index
    %13 = vector.load %arg2[%c1, %c0_12] : memref<9x256xf32, #tpu.memory_space<vmem>>, vector<1x256xf32>
    %14 = vector.broadcast %13 : vector<1x256xf32> to vector<4x256xf32>
    %15 = arith.mulf %12, %14 : vector<4x256xf32>
    %16 = arith.truncf %15 : vector<4x256xf32> to vector<4x256xbf16>
    %c4 = arith.constant 4 : index
    %c0_13 = arith.constant 0 : index
    %17 = vector.load %arg22[%c4, %c0_13] : memref<36x256xbf16, #tpu.memory_space<vmem>>, vector<4x256xbf16>
    tpu.vector_store %arg22[%c4, %c0_13], %16 {strides = array<i32>} : memref<36x256xbf16, #tpu.memory_space<vmem>>, vector<4x256xbf16>,
    %c0_14 = arith.constant 0 : index
    %c113 = arith.constant 113 : index
    %18 = vector.load %arg18[%c0_14, %c113] : memref<4x512xf32, #tpu.memory_space<vmem>>, vector<4x256xf32>
    %c2 = arith.constant 2 : index
    %c0_15 = arith.constant 0 : index
    %19 = vector.load %arg2[%c2, %c0_15] : memref<9x256xf32, #tpu.memory_space<vmem>>, vector<1x256xf32>
    %20 = vector.broadcast %19 : vector<1x256xf32> to vector<4x256xf32>
    %21 = arith.mulf %18, %20 : vector<4x256xf32>
    %22 = arith.truncf %21 : vector<4x256xf32> to vector<4x256xbf16>
    %c8 = arith.constant 8 : index
    %c0_16 = arith.constant 0 : index
    %23 = vector.load %arg22[%c8, %c0_16] : memref<36x256xbf16, #tpu.memory_space<vmem>>, vector<4x256xbf16>
    tpu.vector_store %arg22[%c8, %c0_16], %22 {strides = array<i32>} : memref<36x256xbf16, #tpu.memory_space<vmem>>, vector<4x256xbf16>,
    %c0_17 = arith.constant 0 : index
    %c127 = arith.constant 127 : index
    %24 = vector.load %arg18[%c0_17, %c127] : memref<4x512xf32, #tpu.memory_space<vmem>>, vector<4x256xf32>
    %c3 = arith.constant 3 : index
    %c0_18 = arith.constant 0 : index
    %25 = vector.load %arg2[%c3, %c0_18] : memref<9x256xf32, #tpu.memory_space<vmem>>, vector<1x256xf32>
    %26 = vector.broadcast %25 : vector<1x256xf32> to vector<4x256xf32>
    %27 = arith.mulf %24, %26 : vector<4x256xf32>
    %28 = arith.truncf %27 : vector<4x256xf32> to vector<4x256xbf16>
    %c12 = arith.constant 12 : index
    %c0_19 = arith.constant 0 : index
    %29 = vector.load %arg22[%c12, %c0_19] : memref<36x256xbf16, #tpu.memory_space<vmem>>, vector<4x256xbf16>
    tpu.vector_store %arg22[%c12, %c0_19], %28 {strides = array<i32>} : memref<36x256xbf16, #tpu.memory_space<vmem>>, vector<4x256xbf16>,
    %c0_20 = arith.constant 0 : index
    %c128_21 = arith.constant 128 : index
    %30 = vector.load %arg18[%c0_20, %c128_21] : memref<4x512xf32, #tpu.memory_space<vmem>>, vector<4x256xf32>
    %31 = arith.truncf %30 : vector<4x256xf32> to vector<4x256xbf16>
    %c16 = arith.constant 16 : index
    %c0_22 = arith.constant 0 : index
    %32 = vector.load %arg22[%c16, %c0_22] : memref<36x256xbf16, #tpu.memory_space<vmem>>, vector<4x256xbf16>
    tpu.vector_store %arg22[%c16, %c0_22], %31 {strides = array<i32>} : memref<36x256xbf16, #tpu.memory_space<vmem>>, vector<4x256xbf16>,
    %c0_23 = arith.constant 0 : index
    %c129 = arith.constant 129 : index
    %33 = vector.load %arg18[%c0_23, %c129] : memref<4x512xf32, #tpu.memory_space<vmem>>, vector<4x256xf32>
    %c5 = arith.constant 5 : index
    %c0_24 = arith.constant 0 : index
    %34 = vector.load %arg2[%c5, %c0_24] : memref<9x256xf32, #tpu.memory_space<vmem>>, vector<1x256xf32>
    %35 = vector.broadcast %34 : vector<1x256xf32> to vector<4x256xf32>
    %36 = arith.mulf %33, %35 : vector<4x256xf32>
    %37 = arith.truncf %36 : vector<4x256xf32> to vector<4x256xbf16>
    %c20 = arith.constant 20 : index
    %c0_25 = arith.constant 0 : index
    %38 = vector.load %arg22[%c20, %c0_25] : memref<36x256xbf16, #tpu.memory_space<vmem>>, vector<4x256xbf16>
    tpu.vector_store %arg22[%c20, %c0_25], %37 {strides = array<i32>} : memref<36x256xbf16, #tpu.memory_space<vmem>>, vector<4x256xbf16>,
    %c0_26 = arith.constant 0 : index
    %c143 = arith.constant 143 : index
    %39 = vector.load %arg18[%c0_26, %c143] : memref<4x512xf32, #tpu.memory_space<vmem>>, vector<4x256xf32>
    %c6 = arith.constant 6 : index
    %c0_27 = arith.constant 0 : index
    %40 = vector.load %arg2[%c6, %c0_27] : memref<9x256xf32, #tpu.memory_space<vmem>>, vector<1x256xf32>
    %41 = vector.broadcast %40 : vector<1x256xf32> to vector<4x256xf32>
    %42 = arith.mulf %39, %41 : vector<4x256xf32>
    %43 = arith.truncf %42 : vector<4x256xf32> to vector<4x256xbf16>
    %c24 = arith.constant 24 : index
    %c0_28 = arith.constant 0 : index
    %44 = vector.load %arg22[%c24, %c0_28] : memref<36x256xbf16, #tpu.memory_space<vmem>>, vector<4x256xbf16>
    tpu.vector_store %arg22[%c24, %c0_28], %43 {strides = array<i32>} : memref<36x256xbf16, #tpu.memory_space<vmem>>, vector<4x256xbf16>,
    %c0_29 = arith.constant 0 : index
    %c144 = arith.constant 144 : index
    %45 = vector.load %arg18[%c0_29, %c144] : memref<4x512xf32, #tpu.memory_space<vmem>>, vector<4x256xf32>
    %c7 = arith.constant 7 : index
    %c0_30 = arith.constant 0 : index
    %46 = vector.load %arg2[%c7, %c0_30] : memref<9x256xf32, #tpu.memory_space<vmem>>, vector<1x256xf32>
    %47 = vector.broadcast %46 : vector<1x256xf32> to vector<4x256xf32>
    %48 = arith.mulf %45, %47 : vector<4x256xf32>
    %49 = arith.truncf %48 : vector<4x256xf32> to vector<4x256xbf16>
    %c28 = arith.constant 28 : index
    %c0_31 = arith.constant 0 : index
    %50 = vector.load %arg22[%c28, %c0_31] : memref<36x256xbf16, #tpu.memory_space<vmem>>, vector<4x256xbf16>
    tpu.vector_store %arg22[%c28, %c0_31], %49 {strides = array<i32>} : memref<36x256xbf16, #tpu.memory_space<vmem>>, vector<4x256xbf16>,
    %c0_32 = arith.constant 0 : index
    %c145 = arith.constant 145 : index
    %51 = vector.load %arg18[%c0_32, %c145] : memref<4x512xf32, #tpu.memory_space<vmem>>, vector<4x256xf32>
    %c8_33 = arith.constant 8 : index
    %c0_34 = arith.constant 0 : index
    %52 = vector.load %arg2[%c8_33, %c0_34] : memref<9x256xf32, #tpu.memory_space<vmem>>, vector<1x256xf32>
    %53 = vector.broadcast %52 : vector<1x256xf32> to vector<4x256xf32>
    %54 = arith.mulf %51, %53 : vector<4x256xf32>
    %55 = arith.truncf %54 : vector<4x256xf32> to vector<4x256xbf16>
    %c32 = arith.constant 32 : index
    %c0_35 = arith.constant 0 : index
    %56 = vector.load %arg22[%c32, %c0_35] : memref<36x256xbf16, #tpu.memory_space<vmem>>, vector<4x256xbf16>
    tpu.vector_store %arg22[%c32, %c0_35], %55 {strides = array<i32>} : memref<36x256xbf16, #tpu.memory_space<vmem>>, vector<4x256xbf16>,
    %c0_36 = arith.constant 0 : index
    %c0_37 = arith.constant 0 : index
    %57 = vector.load %arg5[%c0_36, %c0_37] : memref<8x36xbf16, #tpu.memory_space<vmem>>, vector<8x36xbf16>
    %c0_38 = arith.constant 0 : index
    %c0_39 = arith.constant 0 : index
    %58 = vector.load %arg22[%c0_38, %c0_39] : memref<36x256xbf16, #tpu.memory_space<vmem>>, vector<36x256xbf16>
    %cst_40 = arith.constant dense<0.000000e+00> : vector<8x256xf32>
    %59 = tpu.matmul %57, %58, %cst_40 {dimension_numbers = #tpu.dot_dimension_numbers<[1], [0], [0], [1], [0, 0, 1, 1], [], []>} : vector<8x36xbf16>, vector<36x256xbf16>, vector<8x256xf32> -> vector<8x256xf32>
    %c0_41 = arith.constant 0 : index
    %c0_42 = arith.constant 0 : index
    %60 = vector.load %arg6[%c0_41, %c0_42] : memref<8x1xf32, #tpu.memory_space<vmem>>, vector<8x1xf32>
    %61 = vector.broadcast %60 : vector<8x1xf32> to vector<8x256xf32>
    %62 = arith.addf %59, %61 : vector<8x256xf32>
    %cst_43 = arith.constant 0.000000e+00 : f32
    %63 = vector.broadcast %cst_43 : f32 to vector<8x256xf32>
    %64 = arith.maximumf %62, %63 : vector<8x256xf32>
    %cst_44 = arith.constant 0.000000e+00 : f32
    %65 = vector.broadcast %cst_44 : f32 to vector<8x128xf32>
    %c0_45 = arith.constant 0 : index
    %c0_46 = arith.constant 0 : index
    %66 = vector.load %arg19[%c0_45, %c0_46] : memref<8x512xf32, #tpu.memory_space<vmem>>, vector<8x128xf32>
    tpu.vector_store %arg19[%c0_45, %c0_46], %65 {strides = array<i32>} : memref<8x512xf32, #tpu.memory_space<vmem>>, vector<8x128xf32>,
    %cst_47 = arith.constant 0.000000e+00 : f32
    %67 = vector.broadcast %cst_47 : f32 to vector<8x128xf32>
    %c0_48 = arith.constant 0 : index
    %c384_49 = arith.constant 384 : index
    %68 = vector.load %arg19[%c0_48, %c384_49] : memref<8x512xf32, #tpu.memory_space<vmem>>, vector<8x128xf32>
    tpu.vector_store %arg19[%c0_48, %c384_49], %67 {strides = array<i32>} : memref<8x512xf32, #tpu.memory_space<vmem>>, vector<8x128xf32>,
    %c0_50 = arith.constant 0 : index
    %c128_51 = arith.constant 128 : index
    %69 = vector.load %arg19[%c0_50, %c128_51] : memref<8x512xf32, #tpu.memory_space<vmem>>, vector<8x256xf32>
    tpu.vector_store %arg19[%c0_50, %c128_51], %64 {strides = array<i32>} : memref<8x512xf32, #tpu.memory_space<vmem>>, vector<8x256xf32>,
    %c0_52 = arith.constant 0 : index
    %c111_53 = arith.constant 111 : index
    %70 = vector.load %arg19[%c0_52, %c111_53] : memref<8x512xf32, #tpu.memory_space<vmem>>, vector<8x256xf32>
    %c0_54 = arith.constant 0 : index
    %c0_55 = arith.constant 0 : index
    %71 = vector.load %arg2[%c0_54, %c0_55] : memref<9x256xf32, #tpu.memory_space<vmem>>, vector<1x256xf32>
    %72 = vector.broadcast %71 : vector<1x256xf32> to vector<8x256xf32>
    %73 = arith.mulf %70, %72 : vector<8x256xf32>
    %74 = arith.truncf %73 : vector<8x256xf32> to vector<8x256xbf16>
    %c0_56 = arith.constant 0 : index
    %c0_57 = arith.constant 0 : index
    %75 = vector.load %arg23[%c0_56, %c0_57] : memref<72x256xbf16, #tpu.memory_space<vmem>>, vector<8x256xbf16>
    tpu.vector_store %arg23[%c0_56, %c0_57], %74 {strides = array<i32>} : memref<72x256xbf16, #tpu.memory_space<vmem>>, vector<8x256xbf16>,
    %c0_58 = arith.constant 0 : index
    %c112_59 = arith.constant 112 : index
    %76 = vector.load %arg19[%c0_58, %c112_59] : memref<8x512xf32, #tpu.memory_space<vmem>>, vector<8x256xf32>
    %c1_60 = arith.constant 1 : index
    %c0_61 = arith.constant 0 : index
    %77 = vector.load %arg2[%c1_60, %c0_61] : memref<9x256xf32, #tpu.memory_space<vmem>>, vector<1x256xf32>
    %78 = vector.broadcast %77 : vector<1x256xf32> to vector<8x256xf32>
    %79 = arith.mulf %76, %78 : vector<8x256xf32>
    %80 = arith.truncf %79 : vector<8x256xf32> to vector<8x256xbf16>
    %c8_62 = arith.constant 8 : index
    %c0_63 = arith.constant 0 : index
    %81 = vector.load %arg23[%c8_62, %c0_63] : memref<72x256xbf16, #tpu.memory_space<vmem>>, vector<8x256xbf16>
    tpu.vector_store %arg23[%c8_62, %c0_63], %80 {strides = array<i32>} : memref<72x256xbf16, #tpu.memory_space<vmem>>, vector<8x256xbf16>,
    %c0_64 = arith.constant 0 : index
    %c113_65 = arith.constant 113 : index
    %82 = vector.load %arg19[%c0_64, %c113_65] : memref<8x512xf32, #tpu.memory_space<vmem>>, vector<8x256xf32>
    %c2_66 = arith.constant 2 : index
    %c0_67 = arith.constant 0 : index
    %83 = vector.load %arg2[%c2_66, %c0_67] : memref<9x256xf32, #tpu.memory_space<vmem>>, vector<1x256xf32>
    %84 = vector.broadcast %83 : vector<1x256xf32> to vector<8x256xf32>
    %85 = arith.mulf %82, %84 : vector<8x256xf32>
    %86 = arith.truncf %85 : vector<8x256xf32> to vector<8x256xbf16>
    %c16_68 = arith.constant 16 : index
    %c0_69 = arith.constant 0 : index
    %87 = vector.load %arg23[%c16_68, %c0_69] : memref<72x256xbf16, #tpu.memory_space<vmem>>, vector<8x256xbf16>
    tpu.vector_store %arg23[%c16_68, %c0_69], %86 {strides = array<i32>} : memref<72x256xbf16, #tpu.memory_space<vmem>>, vector<8x256xbf16>,
    %c0_70 = arith.constant 0 : index
    %c127_71 = arith.constant 127 : index
    %88 = vector.load %arg19[%c0_70, %c127_71] : memref<8x512xf32, #tpu.memory_space<vmem>>, vector<8x256xf32>
    %c3_72 = arith.constant 3 : index
    %c0_73 = arith.constant 0 : index
    %89 = vector.load %arg2[%c3_72, %c0_73] : memref<9x256xf32, #tpu.memory_space<vmem>>, vector<1x256xf32>
    %90 = vector.broadcast %89 : vector<1x256xf32> to vector<8x256xf32>
    %91 = arith.mulf %88, %90 : vector<8x256xf32>
    %92 = arith.truncf %91 : vector<8x256xf32> to vector<8x256xbf16>
    %c24_74 = arith.constant 24 : index
    %c0_75 = arith.constant 0 : index
    %93 = vector.load %arg23[%c24_74, %c0_75] : memref<72x256xbf16, #tpu.memory_space<vmem>>, vector<8x256xbf16>
    tpu.vector_store %arg23[%c24_74, %c0_75], %92 {strides = array<i32>} : memref<72x256xbf16, #tpu.memory_space<vmem>>, vector<8x256xbf16>,
    %c0_76 = arith.constant 0 : index
    %c128_77 = arith.constant 128 : index
    %94 = vector.load %arg19[%c0_76, %c128_77] : memref<8x512xf32, #tpu.memory_space<vmem>>, vector<8x256xf32>
    %95 = arith.truncf %94 : vector<8x256xf32> to vector<8x256xbf16>
    %c32_78 = arith.constant 32 : index
    %c0_79 = arith.constant 0 : index
    %96 = vector.load %arg23[%c32_78, %c0_79] : memref<72x256xbf16, #tpu.memory_space<vmem>>, vector<8x256xbf16>
    tpu.vector_store %arg23[%c32_78, %c0_79], %95 {strides = array<i32>} : memref<72x256xbf16, #tpu.memory_space<vmem>>, vector<8x256xbf16>,
    %c0_80 = arith.constant 0 : index
    %c129_81 = arith.constant 129 : index
    %97 = vector.load %arg19[%c0_80, %c129_81] : memref<8x512xf32, #tpu.memory_space<vmem>>, vector<8x256xf32>
    %c5_82 = arith.constant 5 : index
    %c0_83 = arith.constant 0 : index
    %98 = vector.load %arg2[%c5_82, %c0_83] : memref<9x256xf32, #tpu.memory_space<vmem>>, vector<1x256xf32>
    %99 = vector.broadcast %98 : vector<1x256xf32> to vector<8x256xf32>
    %100 = arith.mulf %97, %99 : vector<8x256xf32>
    %101 = arith.truncf %100 : vector<8x256xf32> to vector<8x256xbf16>
    %c40 = arith.constant 40 : index
    %c0_84 = arith.constant 0 : index
    %102 = vector.load %arg23[%c40, %c0_84] : memref<72x256xbf16, #tpu.memory_space<vmem>>, vector<8x256xbf16>
    tpu.vector_store %arg23[%c40, %c0_84], %101 {strides = array<i32>} : memref<72x256xbf16, #tpu.memory_space<vmem>>, vector<8x256xbf16>,
    %c0_85 = arith.constant 0 : index
    %c143_86 = arith.constant 143 : index
    %103 = vector.load %arg19[%c0_85, %c143_86] : memref<8x512xf32, #tpu.memory_space<vmem>>, vector<8x256xf32>
    %c6_87 = arith.constant 6 : index
    %c0_88 = arith.constant 0 : index
    %104 = vector.load %arg2[%c6_87, %c0_88] : memref<9x256xf32, #tpu.memory_space<vmem>>, vector<1x256xf32>
    %105 = vector.broadcast %104 : vector<1x256xf32> to vector<8x256xf32>
    %106 = arith.mulf %103, %105 : vector<8x256xf32>
    %107 = arith.truncf %106 : vector<8x256xf32> to vector<8x256xbf16>
    %c48 = arith.constant 48 : index
    %c0_89 = arith.constant 0 : index
    %108 = vector.load %arg23[%c48, %c0_89] : memref<72x256xbf16, #tpu.memory_space<vmem>>, vector<8x256xbf16>
    tpu.vector_store %arg23[%c48, %c0_89], %107 {strides = array<i32>} : memref<72x256xbf16, #tpu.memory_space<vmem>>, vector<8x256xbf16>,
    %c0_90 = arith.constant 0 : index
    %c144_91 = arith.constant 144 : index
    %109 = vector.load %arg19[%c0_90, %c144_91] : memref<8x512xf32, #tpu.memory_space<vmem>>, vector<8x256xf32>
    %c7_92 = arith.constant 7 : index
    %c0_93 = arith.constant 0 : index
    %110 = vector.load %arg2[%c7_92, %c0_93] : memref<9x256xf32, #tpu.memory_space<vmem>>, vector<1x256xf32>
    %111 = vector.broadcast %110 : vector<1x256xf32> to vector<8x256xf32>
    %112 = arith.mulf %109, %111 : vector<8x256xf32>
    %113 = arith.truncf %112 : vector<8x256xf32> to vector<8x256xbf16>
    %c56 = arith.constant 56 : index
    %c0_94 = arith.constant 0 : index
    %114 = vector.load %arg23[%c56, %c0_94] : memref<72x256xbf16, #tpu.memory_space<vmem>>, vector<8x256xbf16>
    tpu.vector_store %arg23[%c56, %c0_94], %113 {strides = array<i32>} : memref<72x256xbf16, #tpu.memory_space<vmem>>, vector<8x256xbf16>,
    %c0_95 = arith.constant 0 : index
    %c145_96 = arith.constant 145 : index
    %115 = vector.load %arg19[%c0_95, %c145_96] : memref<8x512xf32, #tpu.memory_space<vmem>>, vector<8x256xf32>
    %c8_97 = arith.constant 8 : index
    %c0_98 = arith.constant 0 : index
    %116 = vector.load %arg2[%c8_97, %c0_98] : memref<9x256xf32, #tpu.memory_space<vmem>>, vector<1x256xf32>
    %117 = vector.broadcast %116 : vector<1x256xf32> to vector<8x256xf32>
    %118 = arith.mulf %115, %117 : vector<8x256xf32>
    %119 = arith.truncf %118 : vector<8x256xf32> to vector<8x256xbf16>
    %c64 = arith.constant 64 : index
    %c0_99 = arith.constant 0 : index
    %120 = vector.load %arg23[%c64, %c0_99] : memref<72x256xbf16, #tpu.memory_space<vmem>>, vector<8x256xbf16>
    tpu.vector_store %arg23[%c64, %c0_99], %119 {strides = array<i32>} : memref<72x256xbf16, #tpu.memory_space<vmem>>, vector<8x256xbf16>,
    %c0_100 = arith.constant 0 : index
    %c0_101 = arith.constant 0 : index
    %121 = vector.load %arg7[%c0_100, %c0_101] : memref<16x72xbf16, #tpu.memory_space<vmem>>, vector<16x72xbf16>
    %c0_102 = arith.constant 0 : index
    %c0_103 = arith.constant 0 : index
    %122 = vector.load %arg23[%c0_102, %c0_103] : memref<72x256xbf16, #tpu.memory_space<vmem>>, vector<72x256xbf16>
    %cst_104 = arith.constant dense<0.000000e+00> : vector<16x256xf32>
    %123 = tpu.matmul %121, %122, %cst_104 {dimension_numbers = #tpu.dot_dimension_numbers<[1], [0], [0], [1], [0, 0, 1, 1], [], []>} : vector<16x72xbf16>, vector<72x256xbf16>, vector<16x256xf32> -> vector<16x256xf32>
    %c0_105 = arith.constant 0 : index
    %c0_106 = arith.constant 0 : index
    %124 = vector.load %arg8[%c0_105, %c0_106] : memref<16x1xf32, #tpu.memory_space<vmem>>, vector<16x1xf32>
    %125 = vector.broadcast %124 : vector<16x1xf32> to vector<16x256xf32>
    %126 = arith.addf %123, %125 : vector<16x256xf32>
    %cst_107 = arith.constant 0.000000e+00 : f32
    %127 = vector.broadcast %cst_107 : f32 to vector<16x256xf32>
    %128 = arith.maximumf %126, %127 : vector<16x256xf32>
    %cst_108 = arith.constant 0.000000e+00 : f32
    %129 = vector.broadcast %cst_108 : f32 to vector<16x128xf32>
    %c0_109 = arith.constant 0 : index
    %c0_110 = arith.constant 0 : index
    %130 = vector.load %arg20[%c0_109, %c0_110] : memref<16x512xf32, #tpu.memory_space<vmem>>, vector<16x128xf32>
    tpu.vector_store %arg20[%c0_109, %c0_110], %129 {strides = array<i32>} : memref<16x512xf32, #tpu.memory_space<vmem>>, vector<16x128xf32>,
    %cst_111 = arith.constant 0.000000e+00 : f32
    %131 = vector.broadcast %cst_111 : f32 to vector<16x128xf32>
    %c0_112 = arith.constant 0 : index
    %c384_113 = arith.constant 384 : index
    %132 = vector.load %arg20[%c0_112, %c384_113] : memref<16x512xf32, #tpu.memory_space<vmem>>, vector<16x128xf32>
    tpu.vector_store %arg20[%c0_112, %c384_113], %131 {strides = array<i32>} : memref<16x512xf32, #tpu.memory_space<vmem>>, vector<16x128xf32>,
    %c0_114 = arith.constant 0 : index
    %c128_115 = arith.constant 128 : index
    %133 = vector.load %arg20[%c0_114, %c128_115] : memref<16x512xf32, #tpu.memory_space<vmem>>, vector<16x256xf32>
    tpu.vector_store %arg20[%c0_114, %c128_115], %128 {strides = array<i32>} : memref<16x512xf32, #tpu.memory_space<vmem>>, vector<16x256xf32>,
    %c0_116 = arith.constant 0 : index
    %c129_117 = arith.constant 129 : index
    %134 = vector.load %arg20[%c0_116, %c129_117] : memref<16x512xf32, #tpu.memory_space<vmem>>, vector<16x256xf32>
    %c0_118 = arith.constant 0 : index
    %c144_119 = arith.constant 144 : index
    %135 = vector.load %arg20[%c0_118, %c144_119] : memref<16x512xf32, #tpu.memory_space<vmem>>, vector<16x256xf32>
    %c0_120 = arith.constant 0 : index
    %c145_121 = arith.constant 145 : index
    %136 = vector.load %arg20[%c0_120, %c145_121] : memref<16x512xf32, #tpu.memory_space<vmem>>, vector<16x256xf32>
    %137 = arith.maximumf %128, %134 : vector<16x256xf32>
    %138 = arith.maximumf %135, %136 : vector<16x256xf32>
    %139 = arith.maximumf %137, %138 : vector<16x256xf32>
    %cst_122 = arith.constant 0.000000e+00 : f32
    %140 = vector.broadcast %cst_122 : f32 to vector<16x128xf32>
    %c0_123 = arith.constant 0 : index
    %c0_124 = arith.constant 0 : index
    %141 = vector.load %arg21[%c0_123, %c0_124] : memref<16x512xf32, #tpu.memory_space<vmem>>, vector<16x128xf32>
    tpu.vector_store %arg21[%c0_123, %c0_124], %140 {strides = array<i32>} : memref<16x512xf32, #tpu.memory_space<vmem>>, vector<16x128xf32>,
    %cst_125 = arith.constant 0.000000e+00 : f32
    %142 = vector.broadcast %cst_125 : f32 to vector<16x128xf32>
    %c0_126 = arith.constant 0 : index
    %c384_127 = arith.constant 384 : index
    %143 = vector.load %arg21[%c0_126, %c384_127] : memref<16x512xf32, #tpu.memory_space<vmem>>, vector<16x128xf32>
    tpu.vector_store %arg21[%c0_126, %c384_127], %142 {strides = array<i32>} : memref<16x512xf32, #tpu.memory_space<vmem>>, vector<16x128xf32>,
    %c0_128 = arith.constant 0 : index
    %c128_129 = arith.constant 128 : index
    %144 = vector.load %arg21[%c0_128, %c128_129] : memref<16x512xf32, #tpu.memory_space<vmem>>, vector<16x256xf32>
    tpu.vector_store %arg21[%c0_128, %c128_129], %139 {strides = array<i32>} : memref<16x512xf32, #tpu.memory_space<vmem>>, vector<16x256xf32>,
    %c0_130 = arith.constant 0 : index
    %c94 = arith.constant 94 : index
    %145 = vector.load %arg21[%c0_130, %c94] : memref<16x512xf32, #tpu.memory_space<vmem>>, vector<16x256xf32>
    %c0_131 = arith.constant 0 : index
    %c0_132 = arith.constant 0 : index
    %146 = vector.load %arg3[%c0_131, %c0_132] : memref<9x256xf32, #tpu.memory_space<vmem>>, vector<1x256xf32>
    %147 = vector.broadcast %146 : vector<1x256xf32> to vector<16x256xf32>
    %148 = arith.mulf %145, %147 : vector<16x256xf32>
    %149 = arith.truncf %148 : vector<16x256xf32> to vector<16x256xbf16>
    %c0_133 = arith.constant 0 : index
    %c0_134 = arith.constant 0 : index
    %150 = vector.load %arg24[%c0_133, %c0_134] : memref<144x256xbf16, #tpu.memory_space<vmem>>, vector<16x256xbf16>
    tpu.vector_store %arg24[%c0_133, %c0_134], %149 {strides = array<i32>} : memref<144x256xbf16, #tpu.memory_space<vmem>>, vector<16x256xbf16>,
    %c0_135 = arith.constant 0 : index
    %c96 = arith.constant 96 : index
    %151 = vector.load %arg21[%c0_135, %c96] : memref<16x512xf32, #tpu.memory_space<vmem>>, vector<16x256xf32>
    %c1_136 = arith.constant 1 : index
    %c0_137 = arith.constant 0 : index
    %152 = vector.load %arg3[%c1_136, %c0_137] : memref<9x256xf32, #tpu.memory_space<vmem>>, vector<1x256xf32>
    %153 = vector.broadcast %152 : vector<1x256xf32> to vector<16x256xf32>
    %154 = arith.mulf %151, %153 : vector<16x256xf32>
    %155 = arith.truncf %154 : vector<16x256xf32> to vector<16x256xbf16>
    %c16_138 = arith.constant 16 : index
    %c0_139 = arith.constant 0 : index
    %156 = vector.load %arg24[%c16_138, %c0_139] : memref<144x256xbf16, #tpu.memory_space<vmem>>, vector<16x256xbf16>
    tpu.vector_store %arg24[%c16_138, %c0_139], %155 {strides = array<i32>} : memref<144x256xbf16, #tpu.memory_space<vmem>>, vector<16x256xbf16>,
    %c0_140 = arith.constant 0 : index
    %c98 = arith.constant 98 : index
    %157 = vector.load %arg21[%c0_140, %c98] : memref<16x512xf32, #tpu.memory_space<vmem>>, vector<16x256xf32>
    %c2_141 = arith.constant 2 : index
    %c0_142 = arith.constant 0 : index
    %158 = vector.load %arg3[%c2_141, %c0_142] : memref<9x256xf32, #tpu.memory_space<vmem>>, vector<1x256xf32>
    %159 = vector.broadcast %158 : vector<1x256xf32> to vector<16x256xf32>
    %160 = arith.mulf %157, %159 : vector<16x256xf32>
    %161 = arith.truncf %160 : vector<16x256xf32> to vector<16x256xbf16>
    %c32_143 = arith.constant 32 : index
    %c0_144 = arith.constant 0 : index
    %162 = vector.load %arg24[%c32_143, %c0_144] : memref<144x256xbf16, #tpu.memory_space<vmem>>, vector<16x256xbf16>
    tpu.vector_store %arg24[%c32_143, %c0_144], %161 {strides = array<i32>} : memref<144x256xbf16, #tpu.memory_space<vmem>>, vector<16x256xbf16>,
    %c0_145 = arith.constant 0 : index
    %c126 = arith.constant 126 : index
    %163 = vector.load %arg21[%c0_145, %c126] : memref<16x512xf32, #tpu.memory_space<vmem>>, vector<16x256xf32>
    %c3_146 = arith.constant 3 : index
    %c0_147 = arith.constant 0 : index
    %164 = vector.load %arg3[%c3_146, %c0_147] : memref<9x256xf32, #tpu.memory_space<vmem>>, vector<1x256xf32>
    %165 = vector.broadcast %164 : vector<1x256xf32> to vector<16x256xf32>
    %166 = arith.mulf %163, %165 : vector<16x256xf32>
    %167 = arith.truncf %166 : vector<16x256xf32> to vector<16x256xbf16>
    %c48_148 = arith.constant 48 : index
    %c0_149 = arith.constant 0 : index
    %168 = vector.load %arg24[%c48_148, %c0_149] : memref<144x256xbf16, #tpu.memory_space<vmem>>, vector<16x256xbf16>
    tpu.vector_store %arg24[%c48_148, %c0_149], %167 {strides = array<i32>} : memref<144x256xbf16, #tpu.memory_space<vmem>>, vector<16x256xbf16>,
    %c0_150 = arith.constant 0 : index
    %c128_151 = arith.constant 128 : index
    %169 = vector.load %arg21[%c0_150, %c128_151] : memref<16x512xf32, #tpu.memory_space<vmem>>, vector<16x256xf32>
    %170 = arith.truncf %169 : vector<16x256xf32> to vector<16x256xbf16>
    %c64_152 = arith.constant 64 : index
    %c0_153 = arith.constant 0 : index
    %171 = vector.load %arg24[%c64_152, %c0_153] : memref<144x256xbf16, #tpu.memory_space<vmem>>, vector<16x256xbf16>
    tpu.vector_store %arg24[%c64_152, %c0_153], %170 {strides = array<i32>} : memref<144x256xbf16, #tpu.memory_space<vmem>>, vector<16x256xbf16>,
    %c0_154 = arith.constant 0 : index
    %c130 = arith.constant 130 : index
    %172 = vector.load %arg21[%c0_154, %c130] : memref<16x512xf32, #tpu.memory_space<vmem>>, vector<16x256xf32>
    %c5_155 = arith.constant 5 : index
    %c0_156 = arith.constant 0 : index
    %173 = vector.load %arg3[%c5_155, %c0_156] : memref<9x256xf32, #tpu.memory_space<vmem>>, vector<1x256xf32>
    %174 = vector.broadcast %173 : vector<1x256xf32> to vector<16x256xf32>
    %175 = arith.mulf %172, %174 : vector<16x256xf32>
    %176 = arith.truncf %175 : vector<16x256xf32> to vector<16x256xbf16>
    %c80 = arith.constant 80 : index
    %c0_157 = arith.constant 0 : index
    %177 = vector.load %arg24[%c80, %c0_157] : memref<144x256xbf16, #tpu.memory_space<vmem>>, vector<16x256xbf16>
    tpu.vector_store %arg24[%c80, %c0_157], %176 {strides = array<i32>} : memref<144x256xbf16, #tpu.memory_space<vmem>>, vector<16x256xbf16>,
    %c0_158 = arith.constant 0 : index
    %c158 = arith.constant 158 : index
    %178 = vector.load %arg21[%c0_158, %c158] : memref<16x512xf32, #tpu.memory_space<vmem>>, vector<16x256xf32>
    %c6_159 = arith.constant 6 : index
    %c0_160 = arith.constant 0 : index
    %179 = vector.load %arg3[%c6_159, %c0_160] : memref<9x256xf32, #tpu.memory_space<vmem>>, vector<1x256xf32>
    %180 = vector.broadcast %179 : vector<1x256xf32> to vector<16x256xf32>
    %181 = arith.mulf %178, %180 : vector<16x256xf32>
    %182 = arith.truncf %181 : vector<16x256xf32> to vector<16x256xbf16>
    %c96_161 = arith.constant 96 : index
    %c0_162 = arith.constant 0 : index
    %183 = vector.load %arg24[%c96_161, %c0_162] : memref<144x256xbf16, #tpu.memory_space<vmem>>, vector<16x256xbf16>
    tpu.vector_store %arg24[%c96_161, %c0_162], %182 {strides = array<i32>} : memref<144x256xbf16, #tpu.memory_space<vmem>>, vector<16x256xbf16>,
    %c0_163 = arith.constant 0 : index
    %c160 = arith.constant 160 : index
    %184 = vector.load %arg21[%c0_163, %c160] : memref<16x512xf32, #tpu.memory_space<vmem>>, vector<16x256xf32>
    %c7_164 = arith.constant 7 : index
    %c0_165 = arith.constant 0 : index
    %185 = vector.load %arg3[%c7_164, %c0_165] : memref<9x256xf32, #tpu.memory_space<vmem>>, vector<1x256xf32>
    %186 = vector.broadcast %185 : vector<1x256xf32> to vector<16x256xf32>
    %187 = arith.mulf %184, %186 : vector<16x256xf32>
    %188 = arith.truncf %187 : vector<16x256xf32> to vector<16x256xbf16>
    %c112_166 = arith.constant 112 : index
    %c0_167 = arith.constant 0 : index
    %189 = vector.load %arg24[%c112_166, %c0_167] : memref<144x256xbf16, #tpu.memory_space<vmem>>, vector<16x256xbf16>
    tpu.vector_store %arg24[%c112_166, %c0_167], %188 {strides = array<i32>} : memref<144x256xbf16, #tpu.memory_space<vmem>>, vector<16x256xbf16>,
    %c0_168 = arith.constant 0 : index
    %c162 = arith.constant 162 : index
    %190 = vector.load %arg21[%c0_168, %c162] : memref<16x512xf32, #tpu.memory_space<vmem>>, vector<16x256xf32>
    %c8_169 = arith.constant 8 : index
    %c0_170 = arith.constant 0 : index
    %191 = vector.load %arg3[%c8_169, %c0_170] : memref<9x256xf32, #tpu.memory_space<vmem>>, vector<1x256xf32>
    %192 = vector.broadcast %191 : vector<1x256xf32> to vector<16x256xf32>
    %193 = arith.mulf %190, %192 : vector<16x256xf32>
    %194 = arith.truncf %193 : vector<16x256xf32> to vector<16x256xbf16>
    %c128_171 = arith.constant 128 : index
    %c0_172 = arith.constant 0 : index
    %195 = vector.load %arg24[%c128_171, %c0_172] : memref<144x256xbf16, #tpu.memory_space<vmem>>, vector<16x256xbf16>
    tpu.vector_store %arg24[%c128_171, %c0_172], %194 {strides = array<i32>} : memref<144x256xbf16, #tpu.memory_space<vmem>>, vector<16x256xbf16>,
    %c0_173 = arith.constant 0 : index
    %c0_174 = arith.constant 0 : index
    %196 = vector.load %arg9[%c0_173, %c0_174] : memref<32x144xbf16, #tpu.memory_space<vmem>>, vector<32x144xbf16>
    %c0_175 = arith.constant 0 : index
    %c0_176 = arith.constant 0 : index
    %197 = vector.load %arg24[%c0_175, %c0_176] : memref<144x256xbf16, #tpu.memory_space<vmem>>, vector<144x256xbf16>
    %cst_177 = arith.constant dense<0.000000e+00> : vector<32x256xf32>
    %198 = tpu.matmul %196, %197, %cst_177 {dimension_numbers = #tpu.dot_dimension_numbers<[1], [0], [0], [1], [0, 0, 1, 1], [], []>} : vector<32x144xbf16>, vector<144x256xbf16>, vector<32x256xf32> -> vector<32x256xf32>
    %c0_178 = arith.constant 0 : index
    %c0_179 = arith.constant 0 : index
    %199 = vector.load %arg10[%c0_178, %c0_179] : memref<32x1xf32, #tpu.memory_space<vmem>>, vector<32x1xf32>
    %200 = vector.broadcast %199 : vector<32x1xf32> to vector<32x256xf32>
    %201 = arith.addf %198, %200 : vector<32x256xf32>
    %cst_180 = arith.constant 0.000000e+00 : f32
    %202 = vector.broadcast %cst_180 : f32 to vector<32x256xf32>
    %203 = arith.maximumf %201, %202 : vector<32x256xf32>
    %c0_181 = arith.constant 0 : index
    %c0_182 = arith.constant 0 : index
    %204 = vector.load %arg4[%c0_181, %c0_182] : memref<256x1xf32, #tpu.memory_space<vmem>>, vector<256x1xf32>
    %cst_183 = arith.constant dense<0.000000e+00> : vector<32x1xf32>
    %205 = tpu.matmul %203, %204, %cst_183 {dimension_numbers = #tpu.dot_dimension_numbers<[1], [0], [0], [1], [0, 0, 1, 1], [], []>} : vector<32x256xf32>, vector<256x1xf32>, vector<32x1xf32> -> vector<32x1xf32>
    %c0_184 = arith.constant 0 : index
    %c0_185 = arith.constant 0 : index
    %206 = vector.load %arg11[%c0_184, %c0_185] : memref<2x32xbf16, #tpu.memory_space<vmem>>, vector<2x32xbf16>
    %207 = arith.truncf %205 : vector<32x1xf32> to vector<32x1xbf16>
    %cst_186 = arith.constant dense<0.000000e+00> : vector<2x1xf32>
    %208 = tpu.matmul %206, %207, %cst_186 {dimension_numbers = #tpu.dot_dimension_numbers<[1], [0], [0], [1], [0, 0, 1, 1], [], []>} : vector<2x32xbf16>, vector<32x1xbf16>, vector<2x1xf32> -> vector<2x1xf32>
    %cst_187 = arith.constant 0.000000e+00 : f32
    %209 = vector.broadcast %cst_187 : f32 to vector<2x1xf32>
    %210 = arith.maximumf %208, %209 : vector<2x1xf32>
    %c0_188 = arith.constant 0 : index
    %c0_189 = arith.constant 0 : index
    %211 = vector.load %arg12[%c0_188, %c0_189] : memref<32x2xbf16, #tpu.memory_space<vmem>>, vector<32x2xbf16>
    %212 = arith.truncf %210 : vector<2x1xf32> to vector<2x1xbf16>
    %cst_190 = arith.constant dense<0.000000e+00> : vector<32x1xf32>
    %213 = tpu.matmul %211, %212, %cst_190 {dimension_numbers = #tpu.dot_dimension_numbers<[1], [0], [0], [1], [0, 0, 1, 1], [], []>} : vector<32x2xbf16>, vector<2x1xbf16>, vector<32x1xf32> -> vector<32x1xf32>
    %cst_191 = arith.constant 0.000000e+00 : f32
    %214 = vector.broadcast %cst_191 : f32 to vector<32x1xf32>
    %215 = arith.subf %214, %213 : vector<32x1xf32>
    %216 = math.exp %215 : vector<32x1xf32>
    %cst_192 = arith.constant 1.000000e+00 : f32
    %217 = vector.broadcast %cst_192 : f32 to vector<32x1xf32>
    %218 = arith.addf %217, %216 : vector<32x1xf32>
    %cst_193 = arith.constant 1.000000e+00 : f32
    %219 = vector.broadcast %cst_193 : f32 to vector<32x1xf32>
    %220 = arith.divf %219, %218 : vector<32x1xf32>
    %221 = arith.mulf %205, %220 : vector<32x1xf32>
    %c0_194 = arith.constant 0 : index
    %c0_195 = arith.constant 0 : index
    %222 = vector.load %arg13[%c0_194, %c0_195] : memref<128x32xbf16, #tpu.memory_space<vmem>>, vector<128x32xbf16>
    %223 = arith.truncf %221 : vector<32x1xf32> to vector<32x1xbf16>
    %cst_196 = arith.constant dense<0.000000e+00> : vector<128x1xf32>
    %224 = tpu.matmul %222, %223, %cst_196 {dimension_numbers = #tpu.dot_dimension_numbers<[1], [0], [0], [1], [0, 0, 1, 1], [], []>} : vector<128x32xbf16>, vector<32x1xbf16>, vector<128x1xf32> -> vector<128x1xf32>
    %c0_197 = arith.constant 0 : index
    %c0_198 = arith.constant 0 : index
    %225 = vector.load %arg14[%c0_197, %c0_198] : memref<128x1xf32, #tpu.memory_space<vmem>>, vector<128x1xf32>
    %226 = arith.addf %224, %225 : vector<128x1xf32>
    %cst_199 = arith.constant 0.000000e+00 : f32
    %227 = vector.broadcast %cst_199 : f32 to vector<128x1xf32>
    %228 = arith.maximumf %226, %227 : vector<128x1xf32>
    %c0_200 = arith.constant 0 : index
    %c0_201 = arith.constant 0 : index
    %229 = vector.load %arg15[%c0_200, %c0_201] : memref<10x128xbf16, #tpu.memory_space<vmem>>, vector<10x128xbf16>
    %230 = arith.truncf %228 : vector<128x1xf32> to vector<128x1xbf16>
    %cst_202 = arith.constant dense<0.000000e+00> : vector<10x1xf32>
    %231 = tpu.matmul %229, %230, %cst_202 {dimension_numbers = #tpu.dot_dimension_numbers<[1], [0], [0], [1], [0, 0, 1, 1], [], []>} : vector<10x128xbf16>, vector<128x1xbf16>, vector<10x1xf32> -> vector<10x1xf32>
    %c0_203 = arith.constant 0 : index
    %c0_204 = arith.constant 0 : index
    %232 = vector.load %arg16[%c0_203, %c0_204] : memref<10x1xf32, #tpu.memory_space<vmem>>, vector<10x1xf32>
    %233 = arith.addf %231, %232 : vector<10x1xf32>
    %c0_205 = arith.constant 0 : index
    %c0_206 = arith.constant 0 : index
    %c0_207 = arith.constant 0 : index
    %234 = vector.load %arg17[%c0_205, %c0_206, %c0_207] : memref<1x10x1xf32, #tpu.memory_space<vmem>>, vector<1x10x1xf32>
    %235 = vector.shape_cast %234 : vector<1x10x1xf32> to vector<10x1xf32>
    %236 = vector.shape_cast %233 : vector<10x1xf32> to vector<1x10x1xf32>
    tpu.vector_store %arg17[%c0_205, %c0_206, %c0_207], %236 {strides = array<i32>} : memref<1x10x1xf32, #tpu.memory_space<vmem>>, vector<1x10x1xf32>,
    return
  }
  func.func @transform_0(%arg0: i32) -> (i32, i32) {
    %c0_i32 = arith.constant 0 : i32
    %c0_i32_0 = arith.constant 0 : i32
    return %c0_i32, %arg0 : i32, i32
  }
  func.func @transform_1(%arg0: i32) -> (i32, i32) {
    %c0_i32 = arith.constant 0 : i32
    %c0_i32_0 = arith.constant 0 : i32
    %c0_i32_1 = arith.constant 0 : i32
    return %c0_i32, %c0_i32_0 : i32, i32
  }
  func.func @transform_2(%arg0: i32) -> (i32, i32) {
    %c0_i32 = arith.constant 0 : i32
    %c0_i32_0 = arith.constant 0 : i32
    %c0_i32_1 = arith.constant 0 : i32
    return %c0_i32, %c0_i32_0 : i32, i32
  }
  func.func @transform_3(%arg0: i32) -> (i32, i32) {
    %c0_i32 = arith.constant 0 : i32
    %c0_i32_0 = arith.constant 0 : i32
    %c0_i32_1 = arith.constant 0 : i32
    return %c0_i32, %c0_i32_0 : i32, i32
  }
  func.func @transform_4(%arg0: i32) -> (i32, i32) {
    %c0_i32 = arith.constant 0 : i32
    %c0_i32_0 = arith.constant 0 : i32
    %c0_i32_1 = arith.constant 0 : i32
    return %c0_i32, %c0_i32_0 : i32, i32
  }
  func.func @transform_5(%arg0: i32) -> (i32, i32) {
    %c0_i32 = arith.constant 0 : i32
    %c0_i32_0 = arith.constant 0 : i32
    %c0_i32_1 = arith.constant 0 : i32
    return %c0_i32, %c0_i32_0 : i32, i32
  }
  func.func @transform_6(%arg0: i32) -> (i32, i32) {
    %c0_i32 = arith.constant 0 : i32
    %c0_i32_0 = arith.constant 0 : i32
    %c0_i32_1 = arith.constant 0 : i32
    return %c0_i32, %c0_i32_0 : i32, i32
  }
  func.func @transform_7(%arg0: i32) -> (i32, i32) {
    %c0_i32 = arith.constant 0 : i32
    %c0_i32_0 = arith.constant 0 : i32
    %c0_i32_1 = arith.constant 0 : i32
    return %c0_i32, %c0_i32_0 : i32, i32
  }
  func.func @transform_8(%arg0: i32) -> (i32, i32) {
    %c0_i32 = arith.constant 0 : i32
    %c0_i32_0 = arith.constant 0 : i32
    %c0_i32_1 = arith.constant 0 : i32
    return %c0_i32, %c0_i32_0 : i32, i32
  }
  func.func @transform_9(%arg0: i32) -> (i32, i32) {
    %c0_i32 = arith.constant 0 : i32
    %c0_i32_0 = arith.constant 0 : i32
    %c0_i32_1 = arith.constant 0 : i32
    return %c0_i32, %c0_i32_0 : i32, i32
  }
  func.func @transform_10(%arg0: i32) -> (i32, i32) {
    %c0_i32 = arith.constant 0 : i32
    %c0_i32_0 = arith.constant 0 : i32
    %c0_i32_1 = arith.constant 0 : i32
    return %c0_i32, %c0_i32_0 : i32, i32
  }
  func.func @transform_11(%arg0: i32) -> (i32, i32) {
    %c0_i32 = arith.constant 0 : i32
    %c0_i32_0 = arith.constant 0 : i32
    %c0_i32_1 = arith.constant 0 : i32
    return %c0_i32, %c0_i32_0 : i32, i32
  }
  func.func @transform_12(%arg0: i32) -> (i32, i32) {
    %c0_i32 = arith.constant 0 : i32
    %c0_i32_0 = arith.constant 0 : i32
    %c0_i32_1 = arith.constant 0 : i32
    return %c0_i32, %c0_i32_0 : i32, i32
  }
  func.func @transform_13(%arg0: i32) -> (i32, i32) {
    %c0_i32 = arith.constant 0 : i32
    %c0_i32_0 = arith.constant 0 : i32
    %c0_i32_1 = arith.constant 0 : i32
    return %c0_i32, %c0_i32_0 : i32, i32
  }
  func.func @transform_14(%arg0: i32) -> (i32, i32) {
    %c0_i32 = arith.constant 0 : i32
    %c0_i32_0 = arith.constant 0 : i32
    %c0_i32_1 = arith.constant 0 : i32
    return %c0_i32, %c0_i32_0 : i32, i32
  }
  func.func @transform_15(%arg0: i32) -> (i32, i32) {
    %c0_i32 = arith.constant 0 : i32
    %c0_i32_0 = arith.constant 0 : i32
    %c0_i32_1 = arith.constant 0 : i32
    return %c0_i32, %c0_i32_0 : i32, i32
  }
  func.func @transform_16(%arg0: i32) -> (i32, i32, i32) {
    %c0_i32 = arith.constant 0 : i32
    %c0_i32_0 = arith.constant 0 : i32
    %c0_i32_1 = arith.constant 0 : i32
    return %arg0, %c0_i32, %c0_i32_0 : i32, i32, i32
  }
}

</mosaic_0001>

<bundles_post_ra>
// kernel: forward.1
= control target key start
LH: loop header
LB: loop body
LE: loop exit
PB: predicated region body
PF: predicated region fallthrough
CT: control target
= control target key end

     0   :  { %s3561_s21 = smov 0   ;;  %s4362_s0 = inlined_call_operand.vmem [shape: f32[4,512], index: 0, kind: input, shape index: {}]   ;;  %s4363_s1 = inlined_call_operand.vmem [shape: f32[9,256], index: 1, kind: input, shape index: {}]   ;;  %s4364_s2 = inlined_call_operand.vmem [shape: f32[9,256], index: 2, kind: input, shape index: {}]   ;;  %s4365_s3 = inlined_call_operand.vmem [shape: f32[256,1], index: 3, kind: input, shape index: {}]   ;;  %s4366_s4 = inlined_call_operand.vmem [shape: bf16[8,36], index: 4, kind: input, shape index: {}]   ;;  %s4367_s5 = inlined_call_operand.vmem [shape: f32[8,1], index: 5, kind: input, shape index: {}]   ;;  %s4368_s6 = inlined_call_operand.vmem [shape: bf16[16,72], index: 6, kind: input, shape index: {}]   ;;  %s4369_s7 = inlined_call_operand.vmem [shape: f32[16,1], index: 7, kind: input, shape index: {}]   ;;  %s4370_s8 = inlined_call_operand.vmem [shape: bf16[32,144], index: 8, kind: input, shape index: {}]   ;;  %s4371_s9 = inlined_call_operand.vmem [shape: f32[32,1], index: 9, kind: input, shape index: {}]   ;;  %s4372_s10 = inlined_call_operand.vmem [shape: bf16[2,32], index: 10, kind: input, shape index: {}]   ;;  %s4373_s11 = inlined_call_operand.vmem [shape: bf16[32,2], index: 11, kind: input, shape index: {}]   ;;  %s4374_s12 = inlined_call_operand.vmem [shape: bf16[128,32], index: 12, kind: input, shape index: {}]   ;;  %s4375_s13 = inlined_call_operand.vmem [shape: f32[128,1], index: 13, kind: input, shape index: {}]   ;;  %s4376_s14 = inlined_call_operand.vmem [shape: bf16[10,128], index: 14, kind: input, shape index: {}]   ;;  %s4377_s15 = inlined_call_operand.vmem [shape: f32[10,1], index: 15, kind: input, shape index: {}]   ;;  %s4378_s16 = inlined_call_operand.vmem [shape: f32[2,10,1], index: 16, kind: output, shape index: {}]  }
   0x1   :  { %4385 = sst [smem:[#allocation9_spill]] %s4362_s0 }
   0x2 LB: > { %s3567_s22 = sadd.s32 4294967295, %s3455_s21   ;;  %p3009_p0 = scmp.ge.s32.totalorder %s3455_s21, 1  ;;  %s3455_s21 = sphi %s3561_s21, %s26_s21  }
   0x3   : > { %p463_p1 = scmp.lt.s32.totalorder %s3455_s21, 3 }
   0x5   : > { %p464_p2 = pnand %p3009_p0, %p463_p1 }
   0x6   : > { %s3010_s20 = sshll.u32 (!%p464_p2), %s3567_s22, 1  ;;  %s3457_s27 = smov (!%p464_p2), 17  }
   0x7   : > { %467 = sbr.rel (%p464_p2) target bundleno = 2613 (0xa35), region = 84  ;;  %p514_p3 = scmp.lt.s32.totalorder (!%p464_p2), %s3010_s20, 3 }
   0x8   : > { %s3458_s28 = smov (!%p464_p2), 16   ;;  %s4386_s17 = sld [smem:[#allocation9_spill]] (!%p464_p2) }
   0x9   : > { %s3460_s19 = smov (!%p464_p2), 15   ;;  %s4383_s23 = smov (!%p464_p2), 127  }
   0xa   : > { %s4379_s24 = smov (!%p464_p2), 112   ;;  %s3464_s25 = smov (!%p464_p2), 113  }
   0xb   : > { %s4381_s26 = smov (!%p464_p2), 111   ;;  %s3467_s0 = smov (!%p464_p2), 32  }
   0xc   : > { %v533_v0 = vlaneseq  ;;  %v3035_v2 = vld [vmem:[%s4363_s1 + $0x10] ss:$8 sm:$0x3]  ;;  %v3032_v3 = vld [vmem:[%s4363_s1 + $0x7] ss:$8 sm:$0x3] }
   0xd   : > { %v3029_v4 = vld [vmem:[%s4363_s1 + $0x6] ss:$8 sm:$0x3]  ;;  %v3026_v7 = vld [vmem:[%s4363_s1 + $0x5] ss:$8 sm:$0x3] }
   0xe   : > { %v534_v1 = vshrl.u32 %v533_v0, 7  ;;  %v3022_v8 = vld [vmem:[%s4363_s1 + $0x3] ss:$8 sm:$0x3]  ;;  %s4391_s20 = smov (!%p514_p3, %s3010_s20), 3  ;;  %v3459_v32 = vmov 0.0  }
   0xf   : > { %v3016_v9 = vld [vmem:[%s4363_s1 + $0x1] ss:$8 sm:$0x3]  ;;  %v3019_v20 = vld [vmem:[%s4363_s1 + $0x2] ss:$8 sm:$0x3] }
  0x10   : > { %v3580_v5 = vsub.s32 0, %v534_v1  ;;  %v3582_v6 = vsub.s32 1, %v534_v1  ;;  %v531_v24 = vld [vmem:[%s4363_s1] ss:$8 sm:$0x3]  ;;  %s3011_s29 = sshll.u32 %s4391_s20, 2 }
  0x11   : > { %s517_s18 = scalar_lea.vmem %s4386_s17, %s3011_s29  ;;  %527 = vst [vmem:[#allocation2 + $0xc] sm:$0xf] %v3459_v32  ;;  %526 = vst [vmem:[#allocation2] sm:$0xf] %v3459_v32  ;;  %s3461_s20 = smov 1   ;;  %vm573_vm0 = vcmask 138240  }
  0x12   : > { %v894_v10 = vrot.slane %v3035_v2, %v3580_v5  ;;  %v898_v11 = vrot.slane %v3035_v2, %v3582_v6  ;;  %v844_v12 = vrot.slane %v3032_v3, %v3580_v5  ;;  %v848_v13 = vrot.slane %v3032_v3, %v3582_v6  ;;  %v3619_v31 = vld [vmem:[%s517_s18] sm:$0xff]  ;;  %s4387_s29 = smov 127   ;;  %s3469_s18 = smov 2  }
  0x13   : > { %v796_v14 = vrot.slane %v3029_v4, %v3580_v5  ;;  %v800_v15 = vrot.slane %v3029_v4, %v3582_v6  ;;  %v746_v16 = vrot.slane %v3026_v7, %v3580_v5  ;;  %v750_v17 = vrot.slane %v3026_v7, %v3582_v6  ;;  %528 = vst [vmem:[#allocation2 + $0x4] sm:$0xff] %v3619_v31  ;;  %s3474_s30 = smov 34   ;;  %p519_p4 = scmp.lt.s32.totalorder %s3567_s22, 1 }
  0x14   : > { %v899_v18 = vcombine.low %v894_v10, %v898_v11  ;;  %v849_v19 = vcombine.low %v844_v12, %v848_v13  ;;  %v683_v22 = vrot.slane %v3022_v8, %v3580_v5  ;;  %v687_v23 = vrot.slane %v3022_v8, %v3582_v6 }
  0x15   : > { %v801_v21 = vcombine.low %v796_v14, %v800_v15  ;;  %v751_v25 = vcombine.low %v746_v16, %v750_v17  ;;  %v585_v26 = vrot.slane %v3016_v9, %v3580_v5  ;;  %v589_v27 = vrot.slane %v3016_v9, %v3582_v6  ;;  %s4393_s22 = smov (!%p519_p4, %s3567_s22), 1 }
  0x16   : > { %900 = vrot.lane.b32.xlu0 %v899_v18, %s3457_s27  ;;  %850 = vrot.lane.b32.xlu1 %v849_v19, %s3458_s28  ;;  %v688_v28 = vcombine.low %v683_v22, %v687_v23  ;;  %v635_v29 = vrot.slane %v3019_v20, %v3580_v5  ;;  %v639_v30 = vrot.slane %v3019_v20, %v3582_v6  ;;  %vm671_vm1 = vcmask 121856   ;;  %s3172_s17 = sshll.u32 %s4393_s22, 4 }
  0x17   : > { %v590_v33 = vcombine.low %v585_v26, %v589_v27  ;;  %v536_v34 = vrot.slane %v531_v24, %v3580_v5  ;;  %v540_v35 = vrot.slane %v531_v24, %v3582_v6  ;;  %vm721_vm2 = vcmask 7168  }
  0x18   : > { %v640_v36 = vcombine.low %v635_v29, %v639_v30  ;;  %v887_v40 = vld [vmem:[#allocation2 + $0xc] sm:$0xf]  ;;  %vm644_vm3 = vcmask 924672   ;;  %vm545_vm4 = vcmask 908288   ;;  %vm623_vm5 = vcmask 130048  }
  0x19   : > { %v541_v37 = vcombine.low %v536_v34, %v540_v35  ;;  %v789_v47 = vld [vmem:[#allocation2 + $0xc] sm:$0xf]  ;;  %vm594_vm6 = vcmask 916480   ;;  %v727_v27 = vcombine.high %v3619_v31, %v3619_v31  ;;  %vm692_vm7 = vcmask 1039360  }
  0x1a   : > { %802 = vrot.lane.b32.xlu1 %v801_v21, %s3460_s19  ;;  %752 = vrot.lane.b32.xlu0 %v751_v25, %s3461_s20  ;;  %v530_v0 = vld [vmem:[#allocation2 + $0x8] sm:$0xf]  ;;  %v739_v7 = vld [vmem:[#allocation2 + $0xc] sm:$0xf]  ;;  %v675_v8 = vld [vmem:[#allocation2] sm:$0xff]  ;;  %vm571_vm8 = vcmask 1043456  }
  0x1b   : > { %v628_v1 = vld [vmem:[#allocation2 + $0x8] sm:$0xf]  ;;  %v837_v21 = vld [vmem:[#allocation2 + $0xc] sm:$0xf]  ;;  %v3181_v35 = vpack.c.bf16 %v727_v27, %v3619_v31  ;;  %vm975_vm9 = vcmask 1041408   ;;  %vm971_vm10 = vcmask 293888  }
  0x1c   : > { %v578_v34 = vld [vmem:[#allocation2 + $0x8] sm:$0xf]  ;;  %vm1473_vm11 = vcmask 588800   ;;  %vm1750_vm12 = vcmask 261120   ;;  %vm1819_vm13 = vcmask 244736   ;;  %vm1888_vm14 = vcmask 15360  }
  0x1d   : > { %737 = vst [vmem:[#allocation6 + $0x20] sm:$0x33] %v3181_v35  ;;  %vm1848_vm15 = vcmask 1031168  }
  0x1e   : > { %689 = vrot.lane.b32.xlu1 %v688_v28, %s4383_s23  ;;  %591 = vrot.lane.b32.xlu0 %v590_v33, %s4379_s24 }
  0x22   : > { %641 = vrot.lane.b32.xlu1 %v640_v36, %s3464_s25  ;;  %542 = vrot.lane.b32.xlu0 %v541_v37, %s4381_s26 }
  0x88   : > { %v901_v38 = vpop.permute.xlu0 %900  ;;  %v3632_v39 = vpop.permute.xlu1 %850 }
  0x89   : > { %v902_v41 = vrot.slane %v901_v38, 4  ;;  %v852_v60 = vrot.slane %v3632_v39, 4 }
  0x8b   : > { %v904_v42 = vsel %vm573_vm0, %v902_v41, %v901_v38  ;;  %v908_v43 = vmul.f32 %v902_v41, %v887_v40  ;;  %v854_v13 = vsel %vm623_vm5, %v852_v60, %v3632_v39  ;;  %v858_v33 = vmul.f32 %v852_v60, %v837_v21 }
  0x8c   : > { %v907_v44 = vmul.f32 %v904_v42, %v3619_v31  ;;  %v803_v45 = vpop.permute.xlu1 %802  ;;  %v753_v46 = vpop.permute.xlu0 %752  ;;  %v857_v22 = vmul.f32 %v854_v13, %v3619_v31  ;;  %v3466_v60 = vmov 0   ;;  %v3054_v13 = vld [vmem:[%s4363_s1 + $0x3] ss:$8 sm:$0x3] }
  0x8d   : > { %v804_v48 = vrot.slane %v803_v45, 4  ;;  %v3189_v49 = vpack.c.bf16 %v908_v43, %v908_v43  ;;  %v754_v57 = vrot.slane %v753_v46, 4  ;;  %v3187_v42 = vpack.c.bf16 %v858_v33, %v858_v33  ;;  %1014 = vmatprep.mubr.bf16.mxu0 %v3466_v60  ;;  %3394 = vset.pattern.permute.xlu0 %v3466_v60 }
  0x8e   : > { %v910_v50 = vcombine.high %v907_v44, %v907_v44  ;;  %v860_v39 = vcombine.high %v857_v22, %v857_v22  ;;  %1516 = vmatprep.mubr.bf16.mxu1 %v3466_v60  ;;  %3395 = vset.pattern.permute.xlu1 %v3466_v60 }
  0x8f   : > { %v806_v51 = vsel %vm671_vm1, %v804_v48, %v803_v45  ;;  %925 = vrot.lane.b32.xlu1 %v3189_v49, %s4381_s26  ;;  %v810_v52 = vmul.f32 %v804_v48, %v789_v47  ;;  %v756_v2 = vsel %vm721_vm2, %v754_v57, %v753_v46  ;;  %v760_v19 = vmul.f32 %v754_v57, %v739_v7  ;;  %v3058_v7 = vld [vmem:[%s4363_s1 + $0x5] ss:$8 sm:$0x3] }
  0x90   : > { %v809_v53 = vmul.f32 %v806_v51, %v3619_v31  ;;  %v3639_v54 = vpop.permute.xlu1 %689  ;;  %v592_v55 = vpop.permute.xlu0 %591  ;;  %v3188_v56 = vpack.c.bf16 %v910_v50, %v907_v44  ;;  %v759_v14 = vmul.f32 %v756_v2, %v3619_v31  ;;  %v676_v44 = vld [vmem:[#allocation2 + $0x8] sm:$0xf]  ;;  %v3186_v46 = vpack.c.bf16 %v860_v39, %v857_v22  ;;  %v3064_v2 = vld [vmem:[%s4363_s1 + $0x7] ss:$8 sm:$0x3] }
  0x91   : > { %v3185_v58 = vpack.c.bf16 %v810_v52, %v810_v52  ;;  %v593_v17 = vrot.slane %v592_v55, 4  ;;  %v691_v28 = vrot.slane %v3639_v54, 4  ;;  %v3183_v30 = vpack.c.bf16 %v760_v19, %v760_v19  ;;  %v3048_v19 = vld [vmem:[%s4363_s1 + $0x1] ss:$8 sm:$0x3] }
  0x92   : > { %923 = vrot.lane.b32.xlu0 %v3188_v56, %s4381_s26  ;;  %v812_v59 = vcombine.high %v809_v53, %v809_v53  ;;  %v762_v26 = vcombine.high %v759_v14, %v759_v14  ;;  %v874_v48 = vrot.slane %v3187_v42, 6  ;;  %v873_v51 = vrot.slane %v3186_v46, 6  ;;  %s4389_s26 = smov 112  }
  0x93   : > { %827 = vrot.lane.b32.xlu1 %v3185_v58, %s3464_s25  ;;  %v595_v29 = vsel %vm594_vm6, %v593_v17, %v592_v55  ;;  %v693_v40 = vsel %vm692_vm7, %v691_v28, %v3639_v54  ;;  %v776_v41 = vrot.slane %v3183_v30, 6  ;;  %v599_v43 = vmul.f32 %v593_v17, %v578_v34 }
  0x94   : > { %v642_v61 = vpop.permute.xlu1 %641  ;;  %v543_v62 = vpop.permute.xlu0 %542  ;;  %v3184_v63 = vpack.c.bf16 %v812_v59, %v809_v53  ;;  %v598_v36 = vmul.f32 %v675_v8, %v595_v29  ;;  %v3182_v38 = vpack.c.bf16 %v762_v26, %v759_v14  ;;  %v696_v45 = vmul.f32 %v693_v40, %v675_v8 }
  0x95   : > { %v643_v3 = vrot.slane %v642_v61, 4  ;;  %v544_v4 = vrot.slane %v543_v62, 4  ;;  %v3176_v49 = vpack.c.bf16 %v599_v43, %v599_v43  ;;  %v697_v50 = vmul.f32 %v691_v28, %v676_v44 }
  0x96   : > { %825 = vrot.lane.b32.xlu0 %v3184_v63, %s3464_s25  ;;  %v775_v31 = vrot.slane %v3182_v38, 6  ;;  %v601_v47 = vcombine.high %v598_v36, %v598_v36  ;;  %v699_v53 = vcombine.high %v696_v45, %v696_v45  ;;  %v1232_v14 = vrot.slane %v3058_v7, %v3582_v6 }
  0x97   : > { %v645_v9 = vsel %vm644_vm3, %v643_v3, %v642_v61  ;;  %v546_v10 = vsel %vm545_vm4, %v544_v4, %v543_v62  ;;  %v550_v11 = vmul.f32 %v544_v4, %v530_v0  ;;  %v649_v12 = vmul.f32 %v643_v3, %v628_v1  ;;  %v940_v61 = vld [vmem:[%s4367_s5] sm:$0xff]  ;;  %v3067_v62 = vld [vmem:[%s4363_s1 + $0x10] ss:$8 sm:$0x3] }
  0x98   : > { %v648_v15 = vmul.f32 %v675_v8, %v645_v9  ;;  %v549_v16 = vmul.f32 %v675_v8, %v546_v10  ;;  %v3175_v52 = vpack.c.bf16 %v601_v47, %v598_v36  ;;  %v615_v54 = vrot.slane %v3176_v49, 6  ;;  %v3061_v0 = vld [vmem:[%s4363_s1 + $0x6] ss:$8 sm:$0x3] }
  0x99   : > { %v3174_v18 = vpack.c.bf16 %v550_v11, %v550_v11  ;;  %v3178_v23 = vpack.c.bf16 %v649_v12, %v649_v12  ;;  %v3180_v55 = vpack.c.bf16 %v697_v50, %v697_v50  ;;  %v3179_v57 = vpack.c.bf16 %v699_v53, %v696_v45  ;;  %v3051_v10 = vld [vmem:[%s4363_s1 + $0x2] ss:$8 sm:$0x3] }
  0x9a   : > { %v552_v20 = vcombine.high %v549_v16, %v549_v16  ;;  %v651_v25 = vcombine.high %v648_v15, %v648_v15  ;;  %v614_v56 = vrot.slane %v3175_v52, 6  ;;  %v1363_v63 = vrot.slane %v3067_v62, %v3580_v5 }
  0x9b   : > { %567 = vrot.lane.b32.xlu1 %v3174_v18, %s3457_s27  ;;  %v713_v58 = vrot.slane %v3180_v55, 6  ;;  %v712_v59 = vrot.slane %v3179_v57, 6  ;;  %v1273_v1 = vrot.slane %v3061_v0, %v3580_v5  ;;  %v1367_v3 = vrot.slane %v3067_v62, %v3582_v6 }
  0x9c   : > { %v3173_v24 = vpack.c.bf16 %v552_v20, %v549_v16  ;;  %v3177_v37 = vpack.c.bf16 %v651_v25, %v648_v15  ;;  %v1318_v4 = vrot.slane %v3064_v2, %v3580_v5  ;;  %v1277_v8 = vrot.slane %v3061_v0, %v3582_v6  ;;  %v1032_v16 = vld [vmem:[%s4363_s1] ss:$8 sm:$0x3] }
  0x9d   : > { %v1228_v9 = vrot.slane %v3058_v7, %v3580_v5  ;;  %v1322_v11 = vrot.slane %v3064_v2, %v3582_v6  ;;  %v1127_v12 = vrot.slane %v3051_v10, %v3580_v5  ;;  %v1172_v15 = vrot.slane %v3054_v13, %v3580_v5 }
  0x9e   : > { %565 = vrot.lane.b32.xlu0 %v3173_v24, %s3457_s27  ;;  %v1131_v17 = vrot.slane %v3051_v10, %v3582_v6  ;;  %v1037_v18 = vrot.slane %v1032_v16, %v3580_v5  ;;  %v1176_v20 = vrot.slane %v3054_v13, %v3582_v6  ;;  %v1082_v21 = vrot.slane %v3048_v19, %v3580_v5 }
  0x9f   : > { %666 = vrot.lane.b32.xlu1 %v3178_v23, %s3460_s19  ;;  %v1041_v22 = vrot.slane %v1032_v16, %v3582_v6  ;;  %v1086_v23 = vrot.slane %v3048_v19, %v3582_v6 }
  0xa2   : > { %664 = vrot.lane.b32.xlu0 %v3177_v37, %s3460_s19 }
  0xa3   : > { %779 = vrot.lane.b32.xlu1 %v776_v41, %s4383_s23 }
  0xa6   : > { %777 = vrot.lane.b32.xlu0 %v775_v31, %s4383_s23 }
  0xa7   : > { %877 = vrot.lane.b32.xlu1 %v874_v48, %s4379_s24 }
  0xaa   : > { %875 = vrot.lane.b32.xlu0 %v873_v51, %s4379_s24  ;;  %s4388_s24 = smov 111  }
  0xab   : > { %618 = vrot.lane.b32.xlu1 %v615_v54, %s3458_s28 }
  0xae   : > { %616 = vrot.lane.b32.xlu0 %v614_v56, %s3458_s28 }
  0xaf   : > { %716 = vrot.lane.b32.xlu1 %v713_v58, %s3461_s20 }
  0xb2   : > { %714 = vrot.lane.b32.xlu0 %v712_v59, %s3461_s20 }
  0xb3   : > { %1368 = vrot.lane.b32.xlu1 %v1363_v63, %s3457_s27 }
  0xb6   : > { %943 = vperm.xlu0 %3394, %v940_v61  }
  0xb7   : > { %1370 = vrot.lane.b32.xlu1 %v1367_v3, %s3457_s27 }
  0xba   : > { %1278 = vrot.lane.b32.xlu0 %v1273_v1, %s3460_s19 }
  0xbb   : > { %1280 = vrot.lane.b32.xlu1 %v1277_v8, %s3460_s19 }
  0xbe   : > { %1323 = vrot.lane.b32.xlu0 %v1318_v4, %s3458_s28 }
  0xbf   : > { %1325 = vrot.lane.b32.xlu1 %v1322_v11, %s3458_s28 }
  0xc2   : > { %1233 = vrot.lane.b32.xlu0 %v1228_v9, %s3461_s20 }
  0xc3   : > { %1235 = vrot.lane.b32.xlu1 %v1232_v14, %s3461_s20 }
  0xc6   : > { %1132 = vrot.lane.b32.xlu0 %v1127_v12, %s3464_s25 }
  0xc7   : > { %1134 = vrot.lane.b32.xlu1 %v1131_v17, %s3464_s25 }
  0xca   : > { %1177 = vrot.lane.b32.xlu0 %v1172_v15, %s4387_s29 }
  0xcb   : > { %1179 = vrot.lane.b32.xlu1 %v1176_v20, %s4387_s29 }
  0xce   : > { %1042 = vrot.lane.b32.xlu0 %v1037_v18, %s4388_s24 }
  0xcf   : > { %1044 = vrot.lane.b32.xlu1 %v1041_v22, %s4388_s24 }
  0xd2   : > { %1087 = vrot.lane.b32.xlu0 %v1082_v21, %s4389_s26 }
  0xd3   : > { %1089 = vrot.lane.b32.xlu1 %v1086_v23, %s4389_s26  ;;  %v934_v23 = vld [vmem:[%s4366_s4] sm:$0xf] }
 0x101   : > { %v926_v24 = vpop.permute.xlu1 %925 }
 0x102   : > { %v928_v26 = vrot.slane %v926_v24, 4 }
 0x104   : > { %v924_v25 = vpop.permute.xlu0 %923 }
 0x105   : > { %v927_v27 = vrot.slane %v924_v25, 4  ;;  %v828_v28 = vpop.permute.xlu1 %827 }
 0x106   : > { %v830_v30 = vrot.slane %v828_v28, 4 }
 0x107   : > { %v929_v29 = vsel %vm571_vm8, %v927_v27, %v928_v26 }
 0x108   : > { %v931_v33 = vsel %vm545_vm4, %v924_v25, %v929_v29  ;;  %v826_v34 = vpop.permute.xlu0 %825 }
 0x109   : > { %933 = vst [vmem:[#allocation6 + $0x18] sm:$0x33] %v931_v33  ;;  %v829_v35 = vrot.slane %v826_v34, 4 }
 0x10b   : > { %v831_v36 = vsel %vm571_vm8, %v829_v35, %v830_v30 }
 0x10c   : > { %v833_v37 = vsel %vm644_vm3, %v826_v34, %v831_v36 }
 0x10d   : > { %835 = vst [vmem:[#allocation6 + $0x10] sm:$0x33] %v833_v37  ;;  %v568_v38 = vpop.permute.xlu1 %567 }
 0x10e   : > { %v570_v41 = vrot.slane %v568_v38, 4 }
 0x110   : > { %v566_v39 = vpop.permute.xlu0 %565  ;;  %v939_v40 = vld [vmem:[#allocation6 + $0x18] sm:$0x33] }
 0x111   : > { %v569_v42 = vrot.slane %v566_v39, 4  ;;  %v667_v43 = vpop.permute.xlu1 %666  ;;  %v3043_v44 = vcombine.high %v939_v40, %v939_v40  ;;  %v3042_v45 = vcombine.low %v939_v40, %v939_v40 }
 0x112   : > { %v669_v49 = vrot.slane %v667_v43, 4 }
 0x113   : > { %v572_v31 = vsel %vm571_vm8, %v569_v42, %v570_v41  ;;  %3044 = vmatprep.subr.msk.bf16.mxu0 %vm975_vm9, %v3043_v44  ;;  %v977_v46 = vsel %vm975_vm9, %v3042_v45, 0 }
 0x114   : > { %v574_v47 = vsel %vm573_vm0, %v566_v39, %v572_v31  ;;  %993 = vmatpush1.bf16.msra.mxu0 %v977_v46  ;;  %v665_v48 = vpop.permute.xlu0 %664 }
 0x115   : > { %576 = vst [vmem:[#allocation6 + $0x8] sm:$0x33] %v574_v47  ;;  %v668_v50 = vrot.slane %v665_v48, 4  ;;  %v780_v51 = vpop.permute.xlu1 %779 }
 0x116   : > { %v782_v55 = vrot.slane %v780_v51, 4 }
 0x117   : > { %v670_v52 = vsel %vm571_vm8, %v668_v50, %v669_v49 }
 0x118   : > { %v672_v53 = vsel %vm671_vm1, %v665_v48, %v670_v52  ;;  %v778_v54 = vpop.permute.xlu0 %777 }
 0x119   : > { %674 = vst [vmem:[#allocation6] sm:$0x33] %v672_v53  ;;  %v781_v56 = vrot.slane %v778_v54, 4  ;;  %v878_v57 = vpop.permute.xlu1 %877 }
 0x11a   : > { %v880_v61 = vrot.slane %v878_v57, 4 }
 0x11b   : > { %v783_v58 = vsel %vm571_vm8, %v781_v56, %v782_v55 }
 0x11c   : > { %v785_v59 = vsel %vm692_vm7, %v778_v54, %v783_v58  ;;  %v876_v60 = vpop.permute.xlu0 %875 }
 0x11d   : > { %787 = vst [vmem:[#allocation6 + $0x20] sm:$0xcc] %v785_v59  ;;  %v879_v62 = vrot.slane %v876_v60, 4  ;;  %v619_v63 = vpop.permute.xlu1 %618 }
 0x11e   : > { %v621_v3 = vrot.slane %v619_v63, 4 }
 0x11f   : > { %v881_v0 = vsel %vm571_vm8, %v879_v62, %v880_v61 }
 0x120   : > { %v883_v1 = vsel %vm594_vm6, %v876_v60, %v881_v0  ;;  %v617_v2 = vpop.permute.xlu0 %616 }
 0x121   : > { %885 = vst [vmem:[#allocation6 + $0x10] sm:$0xcc] %v883_v1  ;;  %v620_v4 = vrot.slane %v617_v2, 4  ;;  %v717_v7 = vpop.permute.xlu1 %716 }
 0x122   : > { %v719_v11 = vrot.slane %v717_v7, 4 }
 0x123   : > { %v622_v8 = vsel %vm571_vm8, %v620_v4, %v621_v3 }
 0x124   : > { %v624_v9 = vsel %vm623_vm5, %v617_v2, %v622_v8  ;;  %v715_v10 = vpop.permute.xlu0 %714 }
 0x125   : > { %626 = vst [vmem:[#allocation6 + $0x8] sm:$0xcc] %v624_v9  ;;  %v718_v12 = vrot.slane %v715_v10, 4  ;;  %v1369_v17 = vpop.permute.xlu1 %1368 }
 0x127   : > { %v720_v13 = vsel %vm571_vm8, %v718_v12, %v719_v11 }
 0x128   : > { %v722_v14 = vsel %vm721_vm2, %v715_v10, %v720_v13  ;;  %v3409_v15 = vld [vmem:[#allocation6 + $0x24] ss:$-16 sps:$4 sm:$0xff]   ;;  %v3411_v16 = vld [vmem:[#allocation6 + $0x20] ss:$-16 sps:$4 sm:$0xff]  }
 0x129   : > { %724 = vst [vmem:[#allocation6] sm:$0xcc] %v722_v14  ;;  %994 = vmatprep.subr.bf16.mxu0 %v3409_v15  ;;  %v1371_v18 = vpop.permute.xlu1 %1370 }
 0x12a   : > { %995 = vmatpush1.bf16.msra.mxu0 %v3411_v16  ;;  %v1378_v21 = vmul.f32 0.0, %v1371_v18  ;;  %v1372_v60 = vsel %vm573_vm0, %v1369_v17, %v1371_v18 }
 0x12c   : > { %v3206_v22 = vpack.c.bf16 %v1378_v21, %v1378_v21 }
 0x12d   : > { %v1281_v24 = vpop.permute.xlu1 %1280 }
 0x12e   : > { %v1288_v25 = vmul.f32 0.0, %v1281_v24  ;;  %1392 = vrot.lane.b32.xlu1 %v3206_v22, %s4388_s24 }
 0x130   : > { %v3412_v19 = vld [vmem:[#allocation6 + $0xc] ss:$-8 sps:$4 sm:$0xff]   ;;  %v3414_v20 = vld [vmem:[#allocation6 + $0x8] ss:$-8 sps:$4 sm:$0xff]   ;;  %v3202_v26 = vpack.c.bf16 %v1288_v25, %v1288_v25 }
 0x131   : > { %996 = vmatprep.subr.bf16.mxu0 %v3412_v19  ;;  %v1326_v27 = vpop.permute.xlu1 %1325  ;;  %v944_v35 = vpop.permute.xlu0 %943 }
 0x132   : > { %997 = vmatpush1.bf16.msra.mxu0 %v3414_v20  ;;  %v1333_v28 = vmul.f32 0.0, %v1326_v27  ;;  %1302 = vrot.lane.b32.xlu1 %v3202_v26, %s3464_s25 }
 0x134   : > { %v3204_v29 = vpack.c.bf16 %v1333_v28, %v1333_v28 }
 0x135   : > { %3045 = vmatmul.mubr.msk.bf16.vlgmr.msra.gmra.mxu0 %vm971_vm10, %v934_v23  ;;  %v1236_v30 = vpop.permute.xlu1 %1235  ;;  %v1279_v36 = vpop.permute.xlu0 %1278 }
 0x136   : > { %v1243_v33 = vmul.f32 0.0, %v1236_v30  ;;  %1347 = vrot.lane.b32.xlu1 %v3204_v29, %s4389_s26  ;;  %v1282_v4 = vsel %vm671_vm1, %v1279_v36, %v1281_v24 }
 0x138   : > { %v3200_v34 = vpack.c.bf16 %v1243_v33, %v1243_v33 }
 0x139   : > { %v1324_v37 = vpop.permute.xlu0 %1323  ;;  %v1135_v39 = vpop.permute.xlu1 %1134 }
 0x13a   : > { %1257 = vrot.lane.b32.xlu1 %v3200_v34, %s4387_s29  ;;  %v1327_v13 = vsel %vm623_vm5, %v1324_v37, %v1326_v27 }
 0x13d   : > { %v1234_v38 = vpop.permute.xlu0 %1233  ;;  %v1180_v31 = vpop.permute.xlu1 %1179 }
 0x13e   : > { %v1237_v19 = vsel %vm721_vm2, %v1234_v38, %v1236_v30 }
 0x141   : > { %v1133_v40 = vpop.permute.xlu0 %1132  ;;  %v1045_v61 = vpop.permute.xlu1 %1044 }
 0x142   : > { %v1136_v43 = vsel %vm644_vm3, %v1133_v40, %v1135_v39  ;;  %v1140_v45 = vmul.f32 0.0, %v1133_v40 }
 0x145   : > { %v1178_v46 = vpop.permute.xlu0 %1177  ;;  %v1090_v9 = vpop.permute.xlu1 %1089 }
 0x146   : > { %v1181_v49 = vsel %vm692_vm7, %v1178_v46, %v1180_v31  ;;  %v1185_v54 = vmul.f32 0.0, %v1178_v46 }
 0x149   : > { %v1043_v14 = vpop.permute.xlu0 %1042 }
 0x14a   : > { %v1046_v22 = vsel %vm545_vm4, %v1043_v14, %v1045_v61  ;;  %v1050_v25 = vmul.f32 0.0, %v1043_v14 }
 0x14d   : > { %v1088_v23 = vpop.permute.xlu0 %1087 }
 0x14e   : > { %v1091_v28 = vsel %vm594_vm6, %v1088_v23, %v1090_v9  ;;  %v1095_v29 = vmul.f32 0.0, %v1088_v23 }
 0x1f5   : > { %v1016_v41 = vpop.f32.mrf.mxu0 }
 0x1f6   : > { %v1017_v42 = vadd.f32 %v1016_v41, %v944_v35 }
 0x1f7   : > { %v1018_v44 = vpop.f32.mrf.mxu0 }
 0x1f8   : > { %v1023_v47 = vmax.f32 %v1017_v42, 0.0  ;;  %v1019_v48 = vadd.f32 %v1018_v44, %v944_v35  ;;  %v1412_v35 = vld [vmem:[%s4369_s7 + $0x8] sm:$0xff] }
 0x1f9   : > { %v1020_v50 = vpop.f32.mrf.mxu0 }
 0x1fa   : > { %v1024_v51 = vmax.f32 %v1019_v48, 0.0  ;;  %v1141_v52 = vmul.f32 %v1136_v43, %v1023_v47  ;;  %v1186_v57 = vmul.f32 %v1181_v49, %v1023_v47  ;;  %v1376_v2 = vmul.f32 %v1369_v17, %v1023_v47 }
 0x1fb   : > { %v1021_v53 = vpop.f32.mrf.mxu0  ;;  %v1286_v12 = vmul.f32 %v1279_v36, %v1023_v47  ;;  %v1331_v18 = vmul.f32 %v1324_v37, %v1023_v47  ;;  %v1241_v24 = vmul.f32 %v1234_v38, %v1023_v47  ;;  %v1051_v27 = vmul.f32 %v1046_v22, %v1023_v47  ;;  %v1411_v36 = vld [vmem:[%s4369_s7] sm:$0xff]  ;;  %v1393_v37 = vpop.permute.xlu1 %1392 }
 0x1fc   : > { %v3194_v55 = vpack.c.bf16 %v1141_v52, %v1140_v45  ;;  %v1142_v56 = vmul.f32 %v1135_v39, %v1024_v51  ;;  %v1187_v59 = vmul.f32 %v1180_v31, %v1024_v51  ;;  %v3196_v62 = vpack.c.bf16 %v1186_v57, %v1185_v54 }
 0x1fd   : > { %v1377_v63 = vmul.f32 %v1372_v60, %v1024_v51  ;;  %v3758_v0 = vpack.c.bf16 %v1024_v51, %v1023_v47  ;;  %v1052_v3 = vmul.f32 %v1045_v61, %v1024_v51  ;;  %v1287_v8 = vmul.f32 %v1282_v4, %v1024_v51 }
 0x1fe   : > { %1154 = vrot.lane.b32.xlu0 %v3194_v55, %s3460_s19  ;;  %v3195_v58 = vpack.c.bf16 %v1142_v56, %v1142_v56  ;;  %v3197_v1 = vpack.c.bf16 %v1187_v59, %v1187_v59  ;;  %v1097_v10 = vmul.f32 %v1090_v9, %v1024_v51  ;;  %v1332_v16 = vmul.f32 %v1327_v13, %v1024_v51 }
 0x1ff   : > { %v3205_v7 = vpack.c.bf16 %v1377_v63, %v1376_v2  ;;  %v3191_v11 = vpack.c.bf16 %v1052_v3, %v1052_v3  ;;  %v3201_v15 = vpack.c.bf16 %v1287_v8, %v1286_v12  ;;  %v1242_v21 = vmul.f32 %v1237_v19, %v1024_v51  ;;  %v1303_v38 = vpop.permute.xlu1 %1302 }
 0x200   : > { %1156 = vrot.lane.b32.xlu1 %v3195_v58, %s3460_s19  ;;  %v3193_v17 = vpack.c.bf16 %v1097_v10, %v1097_v10  ;;  %v3203_v20 = vpack.c.bf16 %v1332_v16, %v1331_v18  ;;  %v1096_v33 = vmul.f32 %v1091_v28, %v1023_v47  ;;  %v3190_v30 = vpack.c.bf16 %v1051_v27, %v1050_v25 }
 0x201   : > { %v3199_v26 = vpack.c.bf16 %v1242_v21, %v1241_v24  ;;  %v1395_v45 = vrot.slane %v1393_v37, 4  ;;  %v1305_v53 = vrot.slane %v1303_v38, 4 }
 0x202   : > { %1199 = vrot.lane.b32.xlu0 %v3196_v62, %s3461_s20  ;;  %v3192_v34 = vpack.c.bf16 %v1096_v33, %v1095_v29 }
 0x203   : > { %v1348_v39 = vpop.permute.xlu1 %1347 }
 0x204   : > { %1201 = vrot.lane.b32.xlu1 %v3197_v1, %s3461_s20  ;;  %v1350_v56 = vrot.slane %v1348_v39, 4  ;;  %s3472_s20 = smov 96  }
 0x206   : > { %1390 = vrot.lane.b32.xlu0 %v3205_v7, %s4388_s24  ;;  %s3471_s24 = smov 98  }
 0x207   : > { %v1258_v41 = vpop.permute.xlu1 %1257 }
 0x208   : > { %1066 = vrot.lane.b32.xlu1 %v3191_v11, %s3457_s27  ;;  %v1260_v63 = vrot.slane %v1258_v41, 4 }
 0x20a   : > { %1300 = vrot.lane.b32.xlu0 %v3201_v15, %s3464_s25 }
 0x20c   : > { %1111 = vrot.lane.b32.xlu1 %v3193_v17, %s3458_s28 }
 0x20e   : > { %1345 = vrot.lane.b32.xlu0 %v3203_v20, %s4389_s26 }
 0x210   : > { %1420 = vperm.xlu1 %3395, %v1412_v35   ;;  %v3415_v35 = vld [vmem:[%s4368_s6] sm:$0xff]  }
 0x212   : > { %1255 = vrot.lane.b32.xlu0 %v3199_v26, %s4387_s29 }
 0x216   : > { %1064 = vrot.lane.b32.xlu0 %v3190_v30, %s3457_s27 }
 0x21a   : > { %1109 = vrot.lane.b32.xlu0 %v3192_v34, %s3458_s28  ;;  %s3473_s28 = smov 94  }
 0x21e   : > { %1415 = vperm.xlu0 %3394, %v1411_v36  }
 0x222   : > { %3397 = vrot.lane.b32.xlu0 %v3459_v32, %s4387_s29 }
 0x270   : > { %v1155_v40 = vpop.permute.xlu0 %1154 }
 0x271   : > { %v1158_v1 = vrot.slane %v1155_v40, 4 }
 0x272   : > { %v1157_v43 = vpop.permute.xlu1 %1156 }
 0x273   : > { %v1159_v60 = vrot.slane %v1157_v43, 4 }
 0x274   : > { %v1200_v42 = vpop.permute.xlu0 %1199 }
 0x275   : > { %v1203_v61 = vrot.slane %v1200_v42, 4  ;;  %v1160_v12 = vsel %vm571_vm8, %v1158_v1, %v1159_v60 }
 0x276   : > { %v1202_v52 = vpop.permute.xlu1 %1201  ;;  %v1161_v21 = vsel %vm671_vm1, %v1155_v40, %v1160_v12  ;;  %v3104_v12 = vld [vmem:[%s4364_s2 + $0x5] ss:$8 sm:$0x3]  ;;  %vm1710_vm1 = vcmask 785408  }
 0x277   : > { %v1204_v57 = vrot.slane %v1202_v52, 4 }
 0x278   : > { %v1391_v44 = vpop.permute.xlu0 %1390 }
 0x279   : > { %v1394_v31 = vrot.slane %v1391_v44, 4  ;;  %v1205_v8 = vsel %vm571_vm8, %v1203_v61, %v1204_v57 }
 0x27a   : > { %v1067_v2 = vpop.permute.xlu1 %1066  ;;  %v1206_v16 = vsel %vm721_vm2, %v1200_v42, %v1205_v8 }
 0x27b   : > { %v1396_v46 = vsel %vm571_vm8, %v1394_v31, %v1395_v45  ;;  %v1069_v22 = vrot.slane %v1067_v2, 4  ;;  %v3074_v23 = vcombine.high %v1161_v21, %v1206_v16  ;;  %v3073_v28 = vcombine.low %v1161_v21, %v1206_v16  ;;  %v3114_v2 = vld [vmem:[%s4364_s2 + $0x7] ss:$8 sm:$0x3] }
 0x27c   : > { %v1397_v47 = vsel %vm545_vm4, %v1391_v44, %v1396_v46  ;;  %v1301_v48 = vpop.permute.xlu0 %1300  ;;  %v2064_v8 = vrot.slane %v3114_v2, %v3580_v5  ;;  %v3087_v21 = vld [vmem:[%s4364_s2 + $0x1] ss:$8 sm:$0x3]  ;;  %vm1681_vm4 = vcmask 277504  }
 0x27d   : > { %v1304_v49 = vrot.slane %v1301_v48, 4  ;;  %v3080_v50 = vcombine.high %v1397_v47, %v1397_v47  ;;  %v3079_v51 = vcombine.low %v1397_v47, %v1397_v47 }
 0x27e   : > { %v1112_v20 = vpop.permute.xlu1 %1111 }
 0x27f   : > { %3081 = vmatprep.subr.msk.bf16.mxu1 %vm571_vm8, %v3080_v50  ;;  %v1479_v54 = vsel %vm571_vm8, %v3079_v51, 0  ;;  %v1306_v58 = vsel %vm571_vm8, %v1304_v49, %v1305_v53  ;;  %v1114_v25 = vrot.slane %v1112_v20, 4 }
 0x280   : > { %1491 = vmatpush1.bf16.msra.mxu1 %v1479_v54  ;;  %v1346_v55 = vpop.permute.xlu0 %1345  ;;  %v1307_v3 = vsel %vm644_vm3, %v1301_v48, %v1306_v58  ;;  %vm1641_vm3 = vcmask 769024  }
 0x281   : > { %v1349_v59 = vrot.slane %v1346_v55, 4 }
 0x283   : > { %v1351_v62 = vsel %vm571_vm8, %v1349_v59, %v1350_v56 }
 0x284   : > { %v1352_v4 = vsel %vm594_vm6, %v1346_v55, %v1351_v62  ;;  %v1256_v7 = vpop.permute.xlu0 %1255 }
 0x285   : > { %v3077_v9 = vcombine.low %v1307_v3, %v1352_v4  ;;  %v3078_v10 = vcombine.high %v1307_v3, %v1352_v4  ;;  %v1259_v11 = vrot.slane %v1256_v7, 4 }
 0x287   : > { %v1261_v13 = vsel %vm571_vm8, %v1259_v11, %v1260_v63  ;;  %1492 = vmatprep.subr.bf16.mxu1 %v3078_v10 }
 0x288   : > { %v1262_v14 = vsel %vm692_vm7, %v1256_v7, %v1261_v13  ;;  %1493 = vmatpush1.bf16.msra.mxu1 %v3077_v9  ;;  %v1065_v15 = vpop.permute.xlu0 %1064  ;;  %v2068_v7 = vrot.slane %v3114_v2, %v3582_v6  ;;  %v3109_v9 = vld [vmem:[%s4364_s2 + $0x6] ss:$8 sm:$0x3]  ;;  %v1930_v13 = vrot.slane %v3104_v12, %v3582_v6 }
 0x289   : > { %v3075_v17 = vcombine.low %v3758_v0, %v1262_v14  ;;  %v3076_v18 = vcombine.high %v3758_v0, %v1262_v14  ;;  %v1068_v19 = vrot.slane %v1065_v15, 4  ;;  %v1999_v10 = vrot.slane %v3109_v9, %v3582_v6 }
 0x28a   : > { %v1995_v11 = vrot.slane %v3109_v9, %v3580_v5  ;;  %v1926_v14 = vrot.slane %v3104_v12, %v3580_v5 }
 0x28b   : > { %1494 = vmatprep.subr.bf16.mxu1 %v3076_v18  ;;  %v1070_v26 = vsel %vm571_vm8, %v1068_v19, %v1069_v22  ;;  %v1421_v41 = vpop.permute.xlu1 %1420  ;;  %v3092_v18 = vld [vmem:[%s4364_s2 + $0x2] ss:$8 sm:$0x3]  ;;  %v1705_v22 = vrot.slane %v3087_v21, %v3582_v6 }
 0x28c   : > { %1495 = vmatpush1.bf16.msra.mxu1 %v3075_v17  ;;  %v1110_v24 = vpop.permute.xlu0 %1109  ;;  %v1071_v33 = vsel %vm573_vm0, %v1065_v15, %v1070_v26  ;;  %v3097_v15 = vld [vmem:[%s4364_s2 + $0x3] ss:$8 sm:$0x3]  ;;  %v1774_v19 = vrot.slane %v3092_v18, %v3582_v6  ;;  %v1770_v20 = vrot.slane %v3092_v18, %v3580_v5  ;;  %vm1779_vm0 = vcmask 801792  }
 0x28d   : > { %v1113_v27 = vrot.slane %v1110_v24, 4  ;;  %1496 = vmatprep.subr.bf16.mxu1 %v3074_v23  ;;  %v1843_v16 = vrot.slane %v3097_v15, %v3582_v6  ;;  %v1839_v17 = vrot.slane %v3097_v15, %v3580_v5  ;;  %v1701_v23 = vrot.slane %v3087_v21, %v3580_v5 }
 0x28f   : > { %v1115_v29 = vsel %vm571_vm8, %v1113_v27, %v1114_v25  ;;  %v3119_v27 = vld [vmem:[%s4364_s2 + $0x10] ss:$8 sm:$0x3] }
 0x290   : > { %v1116_v0 = vsel %vm623_vm5, %v1110_v24, %v1115_v29  ;;  %1497 = vmatpush1.bf16.msra.mxu1 %v3073_v28  ;;  %v1627_v24 = vld [vmem:[%s4364_s2] ss:$8 sm:$0x3]  ;;  %v2137_v28 = vrot.slane %v3119_v27, %v3582_v6  ;;  %v2133_v29 = vrot.slane %v3119_v27, %v3580_v5 }
 0x291   : > { %v3071_v30 = vcombine.low %v1071_v33, %v1116_v0  ;;  %v3072_v34 = vcombine.high %v1071_v33, %v1116_v0  ;;  %v1636_v25 = vrot.slane %v1627_v24, %v3582_v6  ;;  %v1632_v26 = vrot.slane %v1627_v24, %v3580_v5 }
 0x293   : > { %1498 = vmatprep.subr.bf16.mxu1 %v3072_v34 }
 0x294   : > { %1499 = vmatpush1.bf16.msra.mxu1 %v3071_v30 }
 0x297   : > { %3082 = vmatmul.mubr.msk.bf16.vlgmr.msra.gmra.mxu1 %vm1473_vm11, %v3415_v35 }
 0x299   : > { %v1416_v36 = vpop.permute.xlu0 %1415 }
 0x29d   : > { %v3398_v38 = vpop.permute.xlu0 %3397 }
 0x29e   : > { %v3400_v44 = vunpack.i.h.bf16 %v3398_v38  ;;  %v3399_v45 = vunpack.i.l.bf16 %v3398_v38 }
 0x2a0   : > { %v1582_v50 = vmax.f32 %v3400_v44, 0.0  ;;  %v1579_v51 = vmax.f32 %v3399_v45, 0.0 }
 0x2a2   : > { %v3401_v54 = vpack.i.bf16 %v1582_v50, %v1579_v51 }
 0x357   : > { %v1518_v37 = vpop.f32.mrf.mxu1 }
 0x358   : > { %v1519_v39 = vadd.f32 %v1518_v37, %v1416_v36 }
 0x359   : > { %v1520_v40 = vpop.f32.mrf.mxu1 }
 0x35a   : > { %v1527_v42 = vmax.f32 %v1519_v39, 0.0  ;;  %v1521_v43 = vadd.f32 %v1520_v40, %v1416_v36 }
 0x35b   : > { %v1522_v31 = vpop.f32.mrf.mxu1 }
 0x35c   : > { %v1528_v46 = vmax.f32 %v1521_v43, 0.0  ;;  %v1523_v47 = vadd.f32 %v1522_v31, %v1421_v41  ;;  %1551 = vrot.lane.b32.xlu0 %v1527_v42, %s4387_s29 }
 0x35d   : > { %v1524_v48 = vpop.f32.mrf.mxu1 }
 0x35e   : > { %v1525_v49 = vadd.f32 %v1524_v48, %v1421_v41  ;;  %1553 = vrot.lane.b32.xlu1 %v1528_v46, %s4387_s29  ;;  %v1529_v52 = vmax.f32 %v1523_v47, 0.0 }
 0x360   : > { %v1530_v53 = vmax.f32 %v1525_v49, 0.0 }
 0x362   : > { %1557 = vrot.lane.b32.xlu1 %v1529_v52, %s4387_s29  ;;  %1559 = vrot.lane.b32.xlu0 %v1530_v53, %s4387_s29  ;;  %s3470_s29 = smov 126  }
 0x366   : > { %3402 = vrot.lane.b32.xlu1 %v3401_v54, %s4389_s26 }
 0x3ce   : > { %v1552_v55 = vpop.permute.xlu0 %1551 }
 0x3d0   : > { %v1554_v56 = vpop.permute.xlu1 %1553 }
 0x3d1   : > { %v1563_v57 = vsel %vm692_vm7, %v1552_v55, %v1554_v56  ;;  %v1564_v58 = vsel %vm692_vm7, %v1554_v56, %v3399_v45 }
 0x3d2   : > { %v3813_v59 = vmax.f32 %v1527_v42, %v1563_v57  ;;  %v3815_v60 = vmax.f32 %v1528_v46, %v1564_v58 }
 0x3d4   : > { %v1558_v61 = vpop.permute.xlu1 %1557  ;;  %v1560_v62 = vpop.permute.xlu0 %1559  ;;  %1589 = vrot.lane.b32.xlu1 %v3813_v59, %s4389_s26  ;;  %1591 = vrot.lane.b32.xlu0 %v3815_v60, %s4389_s26 }
 0x3d5   : > { %v1565_v63 = vsel %vm692_vm7, %v1558_v61, %v1560_v62  ;;  %v1566_v1 = vsel %vm692_vm7, %v1560_v62, %v3400_v44  ;;  %vm2948_vm7 = vcmask 1024  }
 0x3d6   : > { %v3826_v3 = vmax.f32 %v1529_v52, %v1565_v63  ;;  %v3828_v4 = vmax.f32 %v1530_v53, %v1566_v1 }
 0x3d8   : > { %1597 = vrot.lane.b32.xlu1 %v3828_v4, %s4389_s26  ;;  %1595 = vrot.lane.b32.xlu0 %v3826_v3, %s4389_s26  ;;  %s3468_s26 = smov 30   ;;  %v3403_v33 = vpop.permute.xlu1 %3402 }
 0x3d9   : > { %v3404_v34 = vunpack.i.l.bf16 %v3403_v33  ;;  %v3405_v35 = vunpack.i.h.bf16 %v3403_v33 }
 0x3dc   : > { %2071 = vrot.lane.b32.xlu1 %v2068_v7, %s3467_s0  ;;  %2069 = vrot.lane.b32.xlu0 %v2064_v8, %s3467_s0 }
 0x3e0   : > { %2002 = vrot.lane.b32.xlu1 %v1999_v10, %s3468_s26  ;;  %2000 = vrot.lane.b32.xlu0 %v1995_v11, %s3468_s26 }
 0x3e4   : > { %1933 = vrot.lane.b32.xlu1 %v1930_v13, %s3469_s18  ;;  %1931 = vrot.lane.b32.xlu0 %v1926_v14, %s3469_s18 }
 0x3e8   : > { %1846 = vrot.lane.b32.xlu1 %v1843_v16, %s3470_s29  ;;  %1844 = vrot.lane.b32.xlu0 %v1839_v17, %s3470_s29 }
 0x3ec   : > { %1777 = vrot.lane.b32.xlu1 %v1774_v19, %s3471_s24  ;;  %1775 = vrot.lane.b32.xlu0 %v1770_v20, %s3471_s24 }
 0x3f0   : > { %1708 = vrot.lane.b32.xlu1 %v1705_v22, %s3472_s20  ;;  %1706 = vrot.lane.b32.xlu0 %v1701_v23, %s3472_s20 }
 0x3f4   : > { %1639 = vrot.lane.b32.xlu1 %v1636_v25, %s3473_s28  ;;  %1637 = vrot.lane.b32.xlu0 %v1632_v26, %s3473_s28 }
 0x3f8   : > { %2140 = vrot.lane.b32.xlu1 %v2137_v28, %s3474_s30  ;;  %2138 = vrot.lane.b32.xlu0 %v2133_v29, %s3474_s30 }
 0x446   : > { %v1590_v0 = vpop.permute.xlu1 %1589  ;;  %v1592_v30 = vpop.permute.xlu0 %1591 }
 0x447   : > { %v1601_v36 = vsel %vm594_vm6, %v1590_v0, %v1592_v30  ;;  %v1602_v37 = vsel %vm594_vm6, %v1592_v30, %v3404_v34 }
 0x448   : > { %v3892_v40 = vmax.f32 %v3813_v59, %v1601_v36  ;;  %v3895_v41 = vmax.f32 %v3815_v60, %v1602_v37 }
 0x44a   : > { %v1598_v38 = vpop.permute.xlu1 %1597  ;;  %v1596_v39 = vpop.permute.xlu0 %1595 }
 0x44b   : > { %v1604_v6 = vsel %vm594_vm6, %v1598_v38, %v3405_v35  ;;  %v1603_v5 = vsel %vm594_vm6, %v1596_v39, %v1598_v38  ;;  %vm2596_vm6 = vcmask 1040384  }
 0x44c   : > { %v3898_v42 = vmax.f32 %v3828_v4, %v1604_v6  ;;  %v3901_v43 = vmax.f32 %v3826_v3, %v1603_v5 }
 0x44e   : > { %v2072_v44 = vpop.permute.xlu1 %2071  ;;  %v3903_v45 = vpop.permute.xlu0 %2069  ;;  %v3242_v31 = vpack.c.bf16 %v3898_v42, %v3895_v41  ;;  %v3241_v46 = vpack.c.bf16 %v3901_v43, %v3892_v40 }
 0x44f   : > { %v2080_v47 = vmul.f32 0.0, %v2072_v44  ;;  %v3911_v48 = vsel %vm1750_vm12, %v3903_v45, %v2072_v44  ;;  %v2078_v49 = vmul.f32 %v3903_v45, %v3892_v40  ;;  %v2081_v35 = vmul.f32 %v3903_v45, %v3901_v43 }
 0x450   : > { %v2079_v50 = vmul.f32 %v3911_v48, %v3895_v41  ;;  %v2082_v36 = vmul.f32 %v3911_v48, %v3898_v42 }
 0x451   : > { %v3234_v51 = vpack.c.bf16 %v2080_v47, %v2080_v47 }
 0x452   : > { %v2003_v52 = vpop.permute.xlu1 %2002  ;;  %v3917_v53 = vpop.permute.xlu0 %2000  ;;  %v3233_v54 = vpack.c.bf16 %v2079_v50, %v2078_v49  ;;  %v3235_v6 = vpack.c.bf16 %v2082_v36, %v2081_v35  ;;  %v2437_v35 = vld [vmem:[%s4365_s3 + $0xd0] sm:$0xff] }
 0x453   : > { %v3921_v55 = vsel %vm1819_vm13, %v3917_v53, %v2003_v52  ;;  %v2009_v56 = vmul.f32 %v3917_v53, %v3892_v40  ;;  %2102 = vrot.lane.b32.xlu1 %v3234_v51, %s3472_s20  ;;  %v2011_v58 = vmul.f32 0.0, %v2003_v52  ;;  %v2012_v5 = vmul.f32 %v3917_v53, %v3901_v43  ;;  %v2421_v36 = vld [vmem:[%s4365_s3 + $0x50] sm:$0xff] }
 0x454   : > { %v2010_v57 = vmul.f32 %v3921_v55, %v3895_v41  ;;  %2100 = vrot.lane.b32.xlu0 %v3233_v54, %s3472_s20  ;;  %v2013_v44 = vmul.f32 %v3921_v55, %v3898_v42 }
 0x455   : > { %v3230_v2 = vpack.c.bf16 %v2011_v58, %v2011_v58 }
 0x456   : > { %v1934_v59 = vpop.permute.xlu1 %1933  ;;  %v3929_v60 = vpop.permute.xlu0 %1931  ;;  %v3229_v61 = vpack.c.bf16 %v2010_v57, %v2009_v56  ;;  %v3231_v50 = vpack.c.bf16 %v2013_v44, %v2012_v5  ;;  %v2434_v5 = vld [vmem:[%s4365_s3 + $0xb8] sm:$0xff] }
 0x457   : > { %v3933_v62 = vsel %vm1888_vm14, %v3929_v60, %v1934_v59  ;;  %v1940_v63 = vmul.f32 %v3929_v60, %v3892_v40  ;;  %2106 = vrot.lane.b32.xlu1 %v3234_v51, %s3472_s20  ;;  %v1942_v11 = vmul.f32 0.0, %v1934_v59  ;;  %v1943_v51 = vmul.f32 %v3929_v60, %v3901_v43  ;;  %v2418_v44 = vld [vmem:[%s4365_s3 + $0x38] sm:$0xff] }
 0x458   : > { %v1941_v1 = vmul.f32 %v3933_v62, %v3895_v41  ;;  %2031 = vrot.lane.b32.xlu0 %v3229_v61, %s3471_s24  ;;  %v1944_v52 = vmul.f32 %v3933_v62, %v3898_v42 }
 0x459   : > { %v3226_v18 = vpack.c.bf16 %v1942_v11, %v1942_v11 }
 0x45a   : > { %v3941_v3 = vpop.permute.xlu1 %1846  ;;  %v1845_v4 = vpop.permute.xlu0 %1844  ;;  %v3225_v7 = vpack.c.bf16 %v1941_v1, %v1940_v63  ;;  %v3227_v56 = vpack.c.bf16 %v1944_v52, %v1943_v51  ;;  %v2415_v51 = vld [vmem:[%s4365_s3 + $0x20] sm:$0xff] }
 0x45b   : > { %v3945_v8 = vsel %vm1848_vm15, %v1845_v4, %v3941_v3  ;;  %v3947_v9 = vmul.f32 0.0, %v1845_v4  ;;  %2033 = vrot.lane.b32.xlu1 %v3230_v2, %s3471_s24  ;;  %v1855_v25 = vmul.f32 %v3941_v3, %v3895_v41  ;;  %v1858_v60 = vmul.f32 %v3941_v3, %v3898_v42 }
 0x45c   : > { %v1854_v10 = vmul.f32 %v3945_v8, %v3892_v40  ;;  %1962 = vrot.lane.b32.xlu0 %v3225_v7, %s3470_s29  ;;  %v1857_v61 = vmul.f32 %v3945_v8, %v3901_v43 }
 0x45d   : > { %v3220_v30 = vpack.c.bf16 %v1855_v25, %v1855_v25  ;;  %v3222_v63 = vpack.c.bf16 %v1858_v60, %v1858_v60  ;;  %v2426_v25 = vld [vmem:[%s4365_s3 + $0x78] sm:$0xff] }
 0x45e   : > { %v3219_v12 = vpack.c.bf16 %v1854_v10, %v3947_v9  ;;  %v3954_v13 = vpop.permute.xlu1 %1777  ;;  %v1776_v14 = vpop.permute.xlu0 %1775 }
 0x45f   : > { %v3958_v15 = vsel %vm1779_vm0, %v1776_v14, %v3954_v13  ;;  %v3960_v16 = vmul.f32 0.0, %v1776_v14  ;;  %2037 = vrot.lane.b32.xlu1 %v3230_v2, %s3471_s24  ;;  %v1786_v34 = vmul.f32 %v3954_v13, %v3895_v41  ;;  %v1789_v1 = vmul.f32 %v3954_v13, %v3898_v42 }
 0x460   : > { %v1785_v17 = vmul.f32 %v3958_v15, %v3892_v40  ;;  %1875 = vrot.lane.b32.xlu0 %v3219_v12, %s3469_s18  ;;  %v3221_v2 = vpack.c.bf16 %v1857_v61, %v3947_v9  ;;  %v1788_v4 = vmul.f32 %v3958_v15, %v3901_v43 }
 0x461   : > { %v3216_v38 = vpack.c.bf16 %v1786_v34, %v1786_v34  ;;  %v3218_v3 = vpack.c.bf16 %v1789_v1, %v1789_v1  ;;  %v2422_v34 = vld [vmem:[%s4365_s3 + $0x58] sm:$0xff] }
 0x462   : > { %v3215_v19 = vpack.c.bf16 %v1785_v17, %v3960_v16  ;;  %v1709_v20 = vpop.permute.xlu1 %1708  ;;  %v1707_v21 = vpop.permute.xlu0 %1706  ;;  %v3217_v8 = vpack.c.bf16 %v1788_v4, %v3960_v16 }
 0x463   : > { %v1711_v22 = vsel %vm1710_vm1, %v1707_v21, %v1709_v20  ;;  %v3968_v23 = vmul.f32 0.0, %v1707_v21  ;;  %1964 = vrot.lane.b32.xlu1 %v3226_v18, %s3470_s29  ;;  %v1717_v39 = vmul.f32 %v1709_v20, %v3895_v41  ;;  %v1720_v7 = vmul.f32 %v1709_v20, %v3898_v42  ;;  %v2213_v20 = vld [vmem:[%s4371_s9 + $0x8] sm:$0xff]  ;;  %v2212_v21 = vld [vmem:[%s4371_s9] sm:$0xff] }
 0x464   : > { %v1716_v24 = vmul.f32 %v1711_v22, %v3892_v40  ;;  %1806 = vrot.lane.b32.xlu0 %v3215_v19, %s3468_s26  ;;  %v1719_v10 = vmul.f32 %v1711_v22, %v3901_v43  ;;  %v2215_v22 = vld [vmem:[%s4371_s9 + $0x18] sm:$0xff] }
 0x465   : > { %v3212_v48 = vpack.c.bf16 %v1717_v39, %v1717_v39  ;;  %v3214_v11 = vpack.c.bf16 %v1720_v7, %v1720_v7  ;;  %v2435_v39 = vld [vmem:[%s4365_s3 + $0xc0] sm:$0xff] }
 0x466   : > { %v3211_v26 = vpack.c.bf16 %v1716_v24, %v3968_v23  ;;  %v1640_v27 = vpop.permute.xlu1 %1639  ;;  %v1638_v28 = vpop.permute.xlu0 %1637  ;;  %v3213_v12 = vpack.c.bf16 %v1719_v10, %v3968_v23  ;;  %v2214_v23 = vld [vmem:[%s4371_s9 + $0x10] sm:$0xff]  ;;  %v2442_v24 = vld [vmem:[%s4365_s3 + $0xf8] sm:$0xff] }
 0x467   : > { %v1642_v29 = vsel %vm1641_vm3, %v1638_v28, %v1640_v27  ;;  %v3977_v33 = vmul.f32 0.0, %v1638_v28  ;;  %1968 = vrot.lane.b32.xlu1 %v3226_v18, %s3470_s29  ;;  %v1648_v49 = vmul.f32 %v1640_v27, %v3895_v41  ;;  %v1651_v9 = vmul.f32 %v1640_v27, %v3898_v42  ;;  %v3416_v18 = vld [vmem:[%s4370_s8 + $0x4] ss:$8 sps:$4 sm:$0xff]   ;;  %3243 = vmatprep.subr.mxu1 %v2442_v24  ;;  %v2425_v27 = vld [vmem:[%s4365_s3 + $0x70] sm:$0xff] }
 0x468   : > { %v1647_v0 = vmul.f32 %v1642_v29, %v3892_v40  ;;  %1737 = vrot.lane.b32.xlu0 %v3211_v26, %s3467_s0  ;;  %v1650_v13 = vmul.f32 %v1642_v29, %v3901_v43  ;;  %3146 = vmatprep.mubr.msk.bf16.mxu0 %vm623_vm5, %v3416_v18  ;;  %v2441_v26 = vld [vmem:[%s4365_s3 + $0xf0] sm:$0xff]  ;;  %v2440_v28 = vld [vmem:[%s4365_s3 + $0xe8] sm:$0xff] }
 0x469   : > { %v3208_v55 = vpack.c.bf16 %v1648_v49, %v1648_v49  ;;  %v3210_v14 = vpack.c.bf16 %v1651_v9, %v1651_v9  ;;  %3244 = vmatpush3.msra.mxu1 %v2426_v25  ;;  %v2424_v29 = vld [vmem:[%s4365_s3 + $0x68] sm:$0xff] }
 0x46a   : > { %v3207_v37 = vpack.c.bf16 %v1647_v0, %v3977_v33  ;;  %v2141_v45 = vpop.permute.xlu1 %2140  ;;  %v2139_v47 = vpop.permute.xlu0 %2138  ;;  %v3209_v15 = vpack.c.bf16 %v1650_v13, %v3977_v33  ;;  %3245 = vmatprep.subr.mxu1 %v2441_v26  ;;  %v2439_v33 = vld [vmem:[%s4365_s3 + $0xe0] sm:$0xff]  ;;  %v2416_v49 = vld [vmem:[%s4365_s3 + $0x28] sm:$0xff] }
 0x46b   : > { %1877 = vrot.lane.b32.xlu1 %v3220_v30, %s3469_s18  ;;  %v2149_v53 = vmul.f32 0.0, %v2141_v45  ;;  %v2143_v54 = vsel %vm1681_vm4, %v2139_v47, %v2141_v45  ;;  %v2147_v57 = vmul.f32 %v2139_v47, %v3892_v40  ;;  %v2150_v16 = vmul.f32 %v2139_v47, %v3901_v43  ;;  %3246 = vmatpush3.msra.mxu1 %v2425_v27  ;;  %v2423_v0 = vld [vmem:[%s4365_s3 + $0x60] sm:$0xff]  ;;  %v2438_v30 = vld [vmem:[%s4365_s3 + $0xd8] sm:$0xff]  ;;  %v2433_v45 = vld [vmem:[%s4365_s3 + $0xb0] sm:$0xff] }
 0x46c   : > { %1668 = vrot.lane.b32.xlu0 %v3207_v37, %s3474_s30  ;;  %v2148_v58 = vmul.f32 %v2143_v54, %v3895_v41  ;;  %v2151_v17 = vmul.f32 %v2143_v54, %v3898_v42  ;;  %3247 = vmatprep.subr.mxu1 %v2440_v28  ;;  %v2436_v37 = vld [vmem:[%s4365_s3 + $0xc8] sm:$0xff]  ;;  %v2417_v47 = vld [vmem:[%s4365_s3 + $0x30] sm:$0xff] }
 0x46d   : > { %v3238_v59 = vpack.c.bf16 %v2149_v53, %v2149_v53  ;;  %3248 = vmatpush3.msra.mxu1 %v2424_v29 }
 0x46e   : > { %v3237_v62 = vpack.c.bf16 %v2148_v58, %v2147_v57  ;;  %v3239_v19 = vpack.c.bf16 %v2151_v17, %v2150_v16  ;;  %3249 = vmatprep.subr.mxu1 %v2439_v33 }
 0x46f   : > { %1808 = vrot.lane.b32.xlu1 %v3216_v38, %s3468_s26  ;;  %3250 = vmatpush3.msra.mxu1 %v2423_v0  ;;  %v2420_v38 = vld [vmem:[%s4365_s3 + $0x48] sm:$0xff] }
 0x470   : > { %2104 = vrot.lane.b32.xlu0 %v3235_v6, %s3472_s20  ;;  %3251 = vmatprep.subr.mxu1 %v2438_v30  ;;  %v2419_v6 = vld [vmem:[%s4365_s3 + $0x40] sm:$0xff] }
 0x471   : > { %3252 = vmatpush3.msra.mxu1 %v2422_v34 }
 0x472   : > { %3253 = vmatprep.subr.mxu1 %v2437_v35 }
 0x473   : > { %1739 = vrot.lane.b32.xlu1 %v3212_v48, %s3467_s0  ;;  %3254 = vmatpush3.msra.mxu1 %v2421_v36  ;;  %v2432_v48 = vld [vmem:[%s4365_s3 + $0xa8] sm:$0xff] }
 0x474   : > { %2035 = vrot.lane.b32.xlu0 %v3231_v50, %s3471_s24  ;;  %3255 = vmatprep.subr.mxu1 %v2436_v37  ;;  %v2431_v50 = vld [vmem:[%s4365_s3 + $0xa0] sm:$0xff] }
 0x475   : > { %3256 = vmatpush3.msra.mxu1 %v2420_v38 }
 0x476   : > { %3257 = vmatprep.subr.mxu1 %v2435_v39 }
 0x477   : > { %1670 = vrot.lane.b32.xlu1 %v3208_v55, %s3474_s30  ;;  %3258 = vmatpush3.msra.mxu1 %v2419_v6 }
 0x478   : > { %1966 = vrot.lane.b32.xlu0 %v3227_v56, %s3470_s29  ;;  %3259 = vmatprep.subr.mxu1 %v2434_v5 }
 0x479   : > { %3260 = vmatpush3.msra.mxu1 %v2418_v44 }
 0x47a   : > { %3261 = vmatprep.subr.mxu1 %v2433_v45 }
 0x47b   : > { %2171 = vrot.lane.b32.xlu1 %v3238_v59, %s3473_s28  ;;  %3262 = vmatpush3.msra.mxu1 %v2417_v47 }
 0x47c   : > { %2169 = vrot.lane.b32.xlu0 %v3237_v62, %s3473_s28  ;;  %3263 = vmatprep.subr.mxu1 %v2432_v48 }
 0x47d   : > { %3264 = vmatpush3.msra.mxu1 %v2416_v49 }
 0x47e   : > { %3265 = vmatprep.subr.mxu1 %v2431_v50 }
 0x47f   : > { %1881 = vrot.lane.b32.xlu1 %v3222_v63, %s3469_s18  ;;  %3266 = vmatpush3.msra.mxu1 %v2415_v51 }
 0x480   : > { %1879 = vrot.lane.b32.xlu0 %v3221_v2, %s3469_s18 }
 0x483   : > { %1812 = vrot.lane.b32.xlu1 %v3218_v3, %s3468_s26 }
 0x484   : > { %1810 = vrot.lane.b32.xlu0 %v3217_v8, %s3468_s26 }
 0x487   : > { %1743 = vrot.lane.b32.xlu1 %v3214_v11, %s3467_s0 }
 0x488   : > { %1741 = vrot.lane.b32.xlu0 %v3213_v12, %s3467_s0 }
 0x48b   : > { %1674 = vrot.lane.b32.xlu1 %v3210_v14, %s3474_s30 }
 0x48c   : > { %1672 = vrot.lane.b32.xlu0 %v3209_v15, %s3474_s30 }
 0x48f   : > { %2175 = vrot.lane.b32.xlu1 %v3238_v59, %s3473_s28 }
 0x490   : > { %2173 = vrot.lane.b32.xlu0 %v3239_v19, %s3473_s28  ;;  %s523_s28 = scalar_lea.vmem %s4378_s16, %s3172_s17 }
 0x493   : > { %2223 = vperm.xlu1 %3395, %v2213_v20  }
 0x494   : > { %2218 = vperm.xlu0 %3394, %v2212_v21  }
 0x497   : > { %2233 = vperm.xlu1 %3395, %v2215_v22  }
 0x498   : > { %2228 = vperm.xlu0 %3394, %v2214_v23  }
 0x4c5   : > { %v2103_v52 = vpop.permute.xlu1 %2102 }
 0x4c6   : > { %v2101_v53 = vpop.permute.xlu0 %2100  ;;  %v2109_v4 = vrot.slane %v2103_v52, 4 }
 0x4c7   : > { %v2108_v3 = vrot.slane %v2101_v53, 4 }
 0x4c9   : > { %v2107_v54 = vpop.permute.xlu1 %2106  ;;  %v2112_v11 = vsel %vm571_vm8, %v2108_v3, %v2109_v4 }
 0x4ca   : > { %v2032_v55 = vpop.permute.xlu0 %2031  ;;  %v2111_v9 = vrot.slane %v2107_v54, 4  ;;  %v2114_v16 = vsel %vm1710_vm1, %v2101_v53, %v2112_v11 }
 0x4cb   : > { %v2039_v13 = vrot.slane %v2032_v55, 4 }
 0x4cd   : > { %v2034_v56 = vpop.permute.xlu1 %2033 }
 0x4ce   : > { %v1963_v57 = vpop.permute.xlu0 %1962  ;;  %v2040_v8 = vrot.slane %v2034_v56, 4 }
 0x4cf   : > { %v1970_v25 = vrot.slane %v1963_v57, 4 }
 0x4d0   : > { %v2043_v17 = vsel %vm571_vm8, %v2039_v13, %v2040_v8 }
 0x4d1   : > { %v2038_v58 = vpop.permute.xlu1 %2037  ;;  %v2045_v29 = vsel %vm1779_vm0, %v2032_v55, %v2043_v17 }
 0x4d2   : > { %v1876_v59 = vpop.permute.xlu0 %1875  ;;  %v2042_v21 = vrot.slane %v2038_v58, 4 }
 0x4d3   : > { %v1883_v48 = vrot.slane %v1876_v59, 4 }
 0x4d5   : > { %v1965_v60 = vpop.permute.xlu1 %1964 }
 0x4d6   : > { %v4128_v61 = vpop.permute.xlu0 %1806  ;;  %v1971_v18 = vrot.slane %v1965_v60, 4 }
 0x4d7   : > { %v1814_v55 = vrot.slane %v4128_v61, 4 }
 0x4d8   : > { %v1974_v28 = vsel %vm571_vm8, %v1970_v25, %v1971_v18 }
 0x4d9   : > { %v1969_v62 = vpop.permute.xlu1 %1968  ;;  %v1976_v6 = vsel %vm1848_vm15, %v1963_v57, %v1974_v28 }
 0x4da   : > { %v4130_v63 = vpop.permute.xlu0 %1737  ;;  %v1973_v30 = vrot.slane %v1969_v62, 4 }
 0x4dd   : > { %v1878_v1 = vpop.permute.xlu1 %1877 }
 0x4de   : > { %v4132_v2 = vpop.permute.xlu0 %1668  ;;  %v1884_v39 = vrot.slane %v1878_v1, 4 }
 0x4e0   : > { %v1887_v50 = vsel %vm571_vm8, %v1883_v48, %v1884_v39  ;;  %v2414_v48 = vld [vmem:[%s4365_s3 + $0x18] sm:$0xff] }
 0x4e1   : > { %v1809_v7 = vpop.permute.xlu1 %1808  ;;  %v1889_v56 = vsel %vm1888_vm14, %v1876_v59, %v1887_v50  ;;  %v1745_v59 = vrot.slane %v4130_v63, 4  ;;  %v2413_v50 = vld [vmem:[%s4365_s3 + $0x10] sm:$0xff] }
 0x4e2   : > { %v2105_v10 = vpop.permute.xlu0 %2104  ;;  %v1815_v51 = vrot.slane %v1809_v7, 4 }
 0x4e3   : > { %v2110_v12 = vrot.slane %v2105_v10, 4 }
 0x4e4   : > { %v1818_v60 = vsel %vm571_vm8, %v1814_v55, %v1815_v51  ;;  %v2428_v51 = vld [vmem:[%s4365_s3 + $0x88] sm:$0xff] }
 0x4e5   : > { %v2115_v14 = vsel %vm571_vm8, %v2110_v12, %v2111_v9  ;;  %v4136_v15 = vpop.permute.xlu1 %1739  ;;  %v1820_v7 = vsel %vm1819_vm13, %v4128_v61, %v1818_v60 }
 0x4e6   : > { %v2116_v19 = vsel %vm1710_vm1, %v2105_v10, %v2115_v14  ;;  %v2036_v20 = vpop.permute.xlu0 %2035  ;;  %v1746_v62 = vrot.slane %v4136_v15, 4  ;;  %v1676_v15 = vrot.slane %v4132_v2, 4 }
 0x4e7   : > { %v3142_v22 = vcombine.low %v2114_v16, %v2116_v19  ;;  %v3143_v23 = vcombine.high %v2114_v16, %v2116_v19  ;;  %v2041_v24 = vrot.slane %v2036_v20, 4 }
 0x4e8   : > { %v1749_v11 = vsel %vm571_vm8, %v1745_v59, %v1746_v62 }
 0x4e9   : > { %v2046_v26 = vsel %vm571_vm8, %v2041_v24, %v2042_v21  ;;  %v4142_v27 = vpop.permute.xlu1 %1670  ;;  %2350 = vmatprep.subr.bf16.mxu0 %v3143_v23  ;;  %v1751_v61 = vsel %vm1750_vm12, %v4130_v63, %v1749_v11 }
 0x4ea   : > { %v2047_v33 = vsel %vm1779_vm0, %v2036_v20, %v2046_v26  ;;  %2351 = vmatpush1.bf16.msra.mxu0 %v3142_v22  ;;  %v1967_v0 = vpop.permute.xlu0 %1966  ;;  %v1677_v9 = vrot.slane %v4142_v27, 4 }
 0x4eb   : > { %v3140_v34 = vcombine.low %v2045_v29, %v2047_v33  ;;  %v3141_v35 = vcombine.high %v2045_v29, %v2047_v33  ;;  %v1972_v36 = vrot.slane %v1967_v0, 4 }
 0x4ec   : > { %v1680_v18 = vsel %vm571_vm8, %v1676_v15, %v1677_v9 }
 0x4ed   : > { %v1977_v37 = vsel %vm571_vm8, %v1972_v36, %v1973_v30  ;;  %v4148_v38 = vpop.permute.xlu1 %2171  ;;  %2352 = vmatprep.subr.bf16.mxu0 %v3141_v35  ;;  %v1682_v28 = vsel %vm1681_vm4, %v4132_v2, %v1680_v18 }
 0x4ee   : > { %v1978_v5 = vsel %vm1848_vm15, %v1967_v0, %v1977_v37  ;;  %2353 = vmatpush1.bf16.msra.mxu0 %v3140_v34  ;;  %v4152_v44 = vpop.permute.xlu0 %2169  ;;  %v2178_v19 = vrot.slane %v4148_v38, 4 }
 0x4ef   : > { %v3138_v45 = vcombine.low %v1976_v6, %v1978_v5  ;;  %v3139_v47 = vcombine.high %v1976_v6, %v1978_v5  ;;  %v2177_v23 = vrot.slane %v4152_v44, 4  ;;  %v3418_v5 = vld [vmem:[%s4370_s8] ss:$8 sps:$4 sm:$0xff]  }
 0x4f1   : > { %v1882_v49 = vpop.permute.xlu1 %1881  ;;  %2354 = vmatprep.subr.bf16.mxu0 %v3139_v47  ;;  %v2181_v30 = vsel %vm571_vm8, %v2177_v23, %v2178_v19  ;;  %v2430_v47 = vld [vmem:[%s4365_s3 + $0x98] sm:$0xff] }
 0x4f2   : > { %v1886_v52 = vrot.slane %v1882_v49, 4  ;;  %2355 = vmatpush1.bf16.msra.mxu0 %v3138_v45  ;;  %v1880_v53 = vpop.permute.xlu0 %1879  ;;  %v2183_v38 = vsel %vm1641_vm3, %v4152_v44, %v2181_v30  ;;  %v3419_v45 = vld [vmem:[%s4370_s8 + $0x14] ss:$8 sps:$4 sm:$0xff]   ;;  %v3421_v44 = vld [vmem:[%s4370_s8 + $0x10] ss:$8 sps:$4 sm:$0xff]   ;;  %3267 = vmatprep.subr.mxu1 %v2430_v47  ;;  %v3422_v30 = vld [vmem:[%s4373_s11] sm:$0xff]  }
 0x4f3   : > { %v1885_v54 = vrot.slane %v1880_v53, 4  ;;  %2356 = vmatprep.subr.bf16.mxu0 %v3242_v31  ;;  %3268 = vmatpush3.msra.mxu1 %v2414_v48  ;;  %v2429_v49 = vld [vmem:[%s4365_s3 + $0x90] sm:$0xff] }
 0x4f4   : > { %3269 = vmatprep.subr.mxu1 %v2429_v49 }
 0x4f5   : > { %v1890_v57 = vsel %vm571_vm8, %v1885_v54, %v1886_v52  ;;  %v1813_v58 = vpop.permute.xlu1 %1812  ;;  %3270 = vmatpush3.msra.mxu1 %v2413_v50  ;;  %v2412_v52 = vld [vmem:[%s4365_s3 + $0x8] sm:$0xff]  ;;  %v2411_v54 = vld [vmem:[%s4365_s3] sm:$0xff] }
 0x4f6   : > { %v1891_v1 = vsel %vm1888_vm14, %v1880_v53, %v1890_v57  ;;  %v1817_v4 = vrot.slane %v1813_v58, 4  ;;  %2357 = vmatpush1.bf16.msra.mxu0 %v3241_v46  ;;  %v1811_v41 = vpop.permute.xlu0 %1810  ;;  %3271 = vmatprep.subr.mxu1 %v2428_v51  ;;  %v2427_v53 = vld [vmem:[%s4365_s3 + $0x80] sm:$0xff] }
 0x4f7   : > { %v3134_v42 = vcombine.low %v1889_v56, %v1891_v1  ;;  %v3135_v31 = vcombine.high %v1889_v56, %v1891_v1  ;;  %v1816_v3 = vrot.slane %v1811_v41, 4  ;;  %3272 = vmatpush3.msra.mxu1 %v2412_v52 }
 0x4f8   : > { %3273 = vmatprep.subr.mxu1 %v2427_v53 }
 0x4f9   : > { %v1821_v8 = vsel %vm571_vm8, %v1816_v3, %v1817_v4  ;;  %v1744_v10 = vpop.permute.xlu1 %1743  ;;  %2358 = vmatprep.subr.bf16.mxu0 %v3135_v31  ;;  %3274 = vmatpush3.msra.mxu1 %v2411_v54 }
 0x4fa   : > { %v1822_v40 = vsel %vm1819_vm13, %v1811_v41, %v1821_v8  ;;  %v1748_v43 = vrot.slane %v1744_v10, 4  ;;  %2359 = vmatpush1.bf16.msra.mxu0 %v3134_v42  ;;  %v1742_v46 = vpop.permute.xlu0 %1741 }
 0x4fb   : > { %v3132_v12 = vcombine.low %v1820_v7, %v1822_v40  ;;  %v3133_v13 = vcombine.high %v1820_v7, %v1822_v40  ;;  %v1747_v14 = vrot.slane %v1742_v46, 4 }
 0x4fd   : > { %v1752_v16 = vsel %vm571_vm8, %v1747_v14, %v1748_v43  ;;  %v1675_v17 = vpop.permute.xlu1 %1674  ;;  %2360 = vmatprep.subr.bf16.mxu0 %v3133_v13 }
 0x4fe   : > { %v1753_v20 = vsel %vm1750_vm12, %v1742_v46, %v1752_v16  ;;  %v1679_v21 = vrot.slane %v1675_v17, 4  ;;  %2361 = vmatpush1.bf16.msra.mxu0 %v3132_v12  ;;  %v1673_v22 = vpop.permute.xlu0 %1672 }
 0x4ff   : > { %v3130_v24 = vcombine.low %v1751_v61, %v1753_v20  ;;  %v3131_v25 = vcombine.high %v1751_v61, %v1753_v20  ;;  %v1678_v26 = vrot.slane %v1673_v22, 4 }
 0x501   : > { %v1683_v63 = vsel %vm571_vm8, %v1678_v26, %v1679_v21  ;;  %v2176_v27 = vpop.permute.xlu1 %2175  ;;  %2362 = vmatprep.subr.bf16.mxu0 %v3131_v25 }
 0x502   : > { %v1684_v29 = vsel %vm1681_vm4, %v1673_v22, %v1683_v63  ;;  %v2180_v33 = vrot.slane %v2176_v27, 4  ;;  %2363 = vmatpush1.bf16.msra.mxu0 %v3130_v24  ;;  %v2174_v0 = vpop.permute.xlu0 %2173 }
 0x503   : > { %v3128_v34 = vcombine.low %v1682_v28, %v1684_v29  ;;  %v3129_v35 = vcombine.high %v1682_v28, %v1684_v29  ;;  %v2179_v36 = vrot.slane %v2174_v0, 4 }
 0x505   : > { %v2184_v37 = vsel %vm571_vm8, %v2179_v36, %v2180_v33  ;;  %2364 = vmatprep.subr.bf16.mxu0 %v3129_v35 }
 0x506   : > { %v2185_v39 = vsel %vm1641_vm3, %v2174_v0, %v2184_v37  ;;  %2365 = vmatpush1.bf16.msra.mxu0 %v3128_v34  ;;  %v2528_v0 = vld [vmem:[%s4372_s10] sm:$0x1] }
 0x507   : > { %v3144_v2 = vcombine.low %v2183_v38, %v2185_v39  ;;  %v3145_v6 = vcombine.high %v2183_v38, %v2185_v39 }
 0x509   : > { %2380 = vmatprep.subr.bf16.mxu0 %v3145_v6 }
 0x50a   : > { %2381 = vmatpush2.bf16.msra.mxu0 %v3144_v2  ;;  %v3423_v2 = vld [vmem:[%s4373_s11 + $0x8] sm:$0xff]  }
 0x50b   : > { %3312 = vmatprep.subr.bf16.mxu0 %v3459_v32 }
 0x50d   : > { %2383 = vmatmul.mubr.bf16.vlgmr.msra.gmra.mxu0 %v3418_v5  ;;  %v3424_v5 = vld [vmem:[%s4374_s12] sm:$0xff]  }
 0x50e   : > { %3147 = vmatprep.mubr.msk.bf16.mxu0 %vm623_vm5, %v3419_v45  ;;  %v2224_v1 = vpop.permute.xlu1 %2223  ;;  %vm3475_vm5 = vmmov 0  }
 0x50f   : > { %v2219_v56 = vpop.permute.xlu0 %2218 }
 0x512   : > { %v2234_v46 = vpop.permute.xlu1 %2233 }
 0x513   : > { %v2229_v7 = vpop.permute.xlu0 %2228 }
 0x515   : > { %2393 = vmatmul.mubr.bf16.gmra.mxu0 %v3421_v44 }
 0x516   : > { %3316 = vmatprep.mubr.msk.bf16.mxu0 %vm3475_vm5, %v3459_v32 }
 0x5cd   : > { %v2384_v55 = vpop.f32.mrf.mxu0 }
 0x5ce   : > { %v2385_v57 = vadd.f32 %v2384_v55, %v2219_v56 }
 0x5cf   : > { %v2386_v58 = vpop.f32.mrf.mxu0 }
 0x5d0   : > { %v2387_v60 = vadd.f32 %v2386_v58, %v2219_v56  ;;  %v2403_v41 = vmax.f32 %v2385_v57, 0.0 }
 0x5d1   : > { %v2388_v62 = vpop.f32.mrf.mxu0 }
 0x5d2   : > { %v2404_v4 = vmax.f32 %v2387_v60, 0.0  ;;  %v2389_v42 = vadd.f32 %v2388_v62, %v2224_v1 }
 0x5d3   : > { %v2390_v31 = vpop.f32.mrf.mxu0 }
 0x5d4   : > { %v2391_v3 = vadd.f32 %v2390_v31, %v2224_v1  ;;  %2507 = vmatprep.mubr.f32.mxu1 %v2404_v4  ;;  %v2405_v10 = vmax.f32 %v2389_v42, 0.0 }
 0x5d5   : > { %v2394_v59 = vpop.f32.mrf.mxu0  ;;  %2508 = vmatmul.mubr.f32.vlgmr.msra.gmra.mxu1 %v2403_v41 }
 0x5d6   : > { %v2406_v8 = vmax.f32 %v2391_v3, 0.0  ;;  %v2395_v11 = vadd.f32 %v2394_v59, %v2229_v7 }
 0x5d7   : > { %v2396_v9 = vpop.f32.mrf.mxu0 }
 0x5d8   : > { %v2397_v40 = vadd.f32 %v2396_v9, %v2229_v7  ;;  %2512 = vmatprep.mubr.f32.mxu1 %v2406_v8  ;;  %v2407_v13 = vmax.f32 %v2395_v11, 0.0 }
 0x5d9   : > { %v2398_v43 = vpop.f32.mrf.mxu0  ;;  %2513 = vmatmul.mubr.f32.gmra.mxu1 %v2405_v10 }
 0x5da   : > { %v2408_v12 = vmax.f32 %v2397_v40, 0.0  ;;  %v2399_v14 = vadd.f32 %v2398_v43, %v2234_v46 }
 0x5db   : > { %v2400_v15 = vpop.f32.mrf.mxu0 }
 0x5dc   : > { %v2401_v61 = vadd.f32 %v2400_v15, %v2234_v46  ;;  %2517 = vmatprep.mubr.f32.mxu1 %v2408_v12  ;;  %v2409_v17 = vmax.f32 %v2399_v14, 0.0  ;;  %v3425_v46 = vld [vmem:[%s4374_s12 + $0x8] sm:$0xff]   ;;  %v3426_v12 = vld [vmem:[%s4374_s12 + $0x10] sm:$0xff]   ;;  %v3428_v14 = vld [vmem:[%s4374_s12 + $0x20] sm:$0xff]  }
 0x5dd   : > { %2518 = vmatmul.mubr.f32.gmra.mxu1 %v2407_v13  ;;  %v3427_v13 = vld [vmem:[%s4374_s12 + $0x18] sm:$0xff]   ;;  %v3429_v15 = vld [vmem:[%s4374_s12 + $0x28] sm:$0xff]  }
 0x5de   : > { %v2410_v16 = vmax.f32 %v2401_v61, 0.0  ;;  %v3430_v61 = vld [vmem:[%s4374_s12 + $0x30] sm:$0xff]  }
 0x5e0   : > { %2522 = vmatprep.mubr.f32.mxu1 %v2410_v16  ;;  %v3431_v16 = vld [vmem:[%s4374_s12 + $0x38] sm:$0xff]  }
 0x5e1   : > { %2523 = vmatmul.mubr.f32.gmra.mxu1 %v2409_v17 }
 0x5e2   : > { %3322 = vmatprep.mubr.msk.bf16.mxu1 %vm1888_vm14, %v3422_v30 }
 0x695   : > { %v3275_v18 = vpop.f32.mrf.mxu1 }
 0x697   : > { %v3276_v19 = vpop.f32.mrf.mxu1 }
 0x698   : > { %v3277_v29 = vadd.f32 %v3276_v19, %v3275_v18 }
 0x699   : > { %v3278_v20 = vpop.f32.mrf.mxu1 }
 0x69b   : > { %v3279_v21 = vpop.f32.mrf.mxu1 }
 0x69c   : > { %v4228_v27 = vadd.f32 %v3279_v21, %v3278_v20 }
 0x69d   : > { %v3281_v22 = vpop.f32.mrf.mxu1 }
 0x69e   : > { %v2529_v33 = vpack.c.bf16 %v4228_v27, %v3277_v29 }
 0x69f   : > { %v3282_v23 = vpop.f32.mrf.mxu1 }
 0x6a0   : > { %v3283_v26 = vadd.f32 %v3282_v23, %v3281_v22 }
 0x6a1   : > { %v3284_v24 = vpop.f32.mrf.mxu1 }
 0x6a3   : > { %v3285_v25 = vpop.f32.mrf.mxu1 }
 0x6a4   : > { %v3286_v63 = vadd.f32 %v3285_v25, %v3284_v24 }
 0x6a6   : > { %v2530_v28 = vpack.c.bf16 %v3286_v63, %v3283_v26 }
 0x6a8   : > { %3313 = vmatpush3.bf16.msra.mxu0 %v2530_v28  ;;  %v2709_v28 = vld [vmem:[%s4375_s13 + $0x70] sm:$0xff] }
 0x6a9   : > { %3314 = vmatprep.subr.bf16.mxu0 %v3459_v32 }
 0x6ac   : > { %3315 = vmatpush3.bf16.msra.mxu0 %v2529_v33 }
 0x6af   : > { %3317 = vmatmul.mubr.msk.bf16.vlgmr.msra.gmra.mxu0 %vm1750_vm12, %v2528_v0  ;;  %v2710_v0 = vld [vmem:[%s4375_s13 + $0x78] sm:$0xff] }
 0x6b0   : > { %3330 = vmatprep.mubr.msk.bf16.mxu0 %vm1750_vm12, %v3424_v5 }
 0x76f   : > { %v2568_v34 = vpop.f32.mrf.mxu0 }
 0x770   : > { %v2574_v35 = vmax.f32 %v2568_v34, 0.0  ;;  %v2707_v34 = vld [vmem:[%s4375_s13 + $0x60] sm:$0xff] }
 0x771   : > { %v3318_v36 = vpop.f32.mrf.mxu0 }
 0x772   : > { %v2579_v37 = vpack.c.bf16 %v2574_v35, %v2574_v35  ;;  %v2708_v36 = vld [vmem:[%s4375_s13 + $0x68] sm:$0xff] }
 0x773   : > { %v2571_v38 = vpop.f32.mrf.mxu0 }
 0x774   : > { %v2598_v39 = vsel %vm2596_vm6, %v2579_v37, 0  ;;  %3366 = vmatprep.subr.msk.bf16.mxu1 %vm2596_vm6, %v2579_v37  ;;  %v2706_v38 = vld [vmem:[%s4375_s13 + $0x58] sm:$0xff] }
 0x775   : > { %v3319_v6 = vpop.f32.mrf.mxu0  ;;  %3321 = vmatpush3.bf16.msra.mxu1 %v2598_v39 }
 0x776   : > { %3346 = vmatprep.subr.bf16.mxu1 %v3459_v32 }
 0x778   : > { %3323 = vmatmul.mubr.msk.bf16.vlgmr.msra.gmra.mxu1 %vm1888_vm14, %v3423_v2 }
 0x779   : > { %3362 = vmatprep.mubr.msk.bf16.mxu1 %vm3475_vm5, %v3459_v32 }
 0x838   : > { %v3324_v45 = vpop.f32.mrf.mxu1 }
 0x839   : > { %v2651_v44 = vsub.f32 0.0, %v3324_v45 }
 0x83a   : > { %v2634_v47 = vpop.f32.mrf.mxu1 }
 0x83b   : > { %v2657_v48 = vmul.f32 1.442695, %v2651_v44  ;;  %v2649_v49 = vsub.f32 0.0, %v2634_v47  ;;  %v2705_v44 = vld [vmem:[%s4375_s13 + $0x50] sm:$0xff] }
 0x83c   : > { %v3325_v50 = vpop.f32.mrf.mxu1 }
 0x83d   : > { %3433 = vpow2.f32 %v2657_v48  ;;  %v2653_v51 = vmul.f32 1.442695, %v2649_v49  ;;  %v2652_v52 = vsub.f32 0.0, %v3325_v50  ;;  %v2704_v50 = vld [vmem:[%s4375_s13 + $0x48] sm:$0xff] }
 0x83e   : > { %v2637_v53 = vpop.f32.mrf.mxu1 }
 0x83f   : > { %3435 = vpow2.f32 %v2653_v51  ;;  %v2659_v54 = vmul.f32 1.442695, %v2652_v52  ;;  %v2650_v55 = vsub.f32 0.0, %v2637_v53  ;;  %v2703_v53 = vld [vmem:[%s4375_s13 + $0x40] sm:$0xff] }
 0x841   : > { %3437 = vpow2.f32 %v2659_v54  ;;  %v2655_v56 = vmul.f32 1.442695, %v2650_v55 }
 0x843   : > { %3439 = vpow2.f32 %v2655_v56 }
 0x84a   : > { %v3434_v57 = vpop.eup %3433 }
 0x84b   : > { %v2663_v58 = vadd.f32 1.0, %v3434_v57  ;;  %v2702_v57 = vld [vmem:[%s4375_s13 + $0x38] sm:$0xff] }
 0x84c   : > { %v3436_v60 = vpop.eup %3435 }
 0x84d   : > { %v2661_v62 = vadd.f32 1.0, %v3436_v60  ;;  %3441 = vrcp.f32 %v2663_v58 }
 0x84e   : > { %v3438_v1 = vpop.eup %3437 }
 0x84f   : > { %v2664_v4 = vadd.f32 1.0, %v3438_v1  ;;  %3443 = vrcp.f32 %v2661_v62  ;;  %v2701_v62 = vld [vmem:[%s4375_s13 + $0x30] sm:$0xff] }
 0x850   : > { %v3440_v41 = vpop.eup %3439 }
 0x851   : > { %3445 = vrcp.f32 %v2664_v4  ;;  %v2662_v42 = vadd.f32 1.0, %v3440_v41 }
 0x853   : > { %3447 = vrcp.f32 %v2662_v42  ;;  %v2700_v42 = vld [vmem:[%s4375_s13 + $0x28] sm:$0xff] }
 0x85a   : > { %v3442_v31 = vpop.eup %3441 }
 0x85b   : > { %v2675_v7 = vmul.f32 %v3442_v31, %v3283_v26 }
 0x85c   : > { %v3444_v3 = vpop.eup %3443 }
 0x85d   : > { %v2673_v9 = vmul.f32 %v3444_v3, %v3277_v29 }
 0x85e   : > { %v3446_v59 = vpop.eup %3445 }
 0x85f   : > { %v2676_v8 = vmul.f32 %v3446_v59, %v3286_v63  ;;  %v2699_v59 = vld [vmem:[%s4375_s13 + $0x20] sm:$0xff] }
 0x860   : > { %v3448_v10 = vpop.eup %3447 }
 0x861   : > { %v2694_v11 = vpack.c.bf16 %v2676_v8, %v2675_v7  ;;  %v2674_v40 = vmul.f32 %v3448_v10, %v4228_v27 }
 0x863   : > { %3326 = vmatprep.subr.bf16.mxu0 %v2694_v11  ;;  %v2693_v43 = vpack.c.bf16 %v2674_v40, %v2673_v9 }
 0x864   : > { %3327 = vmatpush3.bf16.msra.mxu0 %v2694_v11  ;;  %v2698_v11 = vld [vmem:[%s4375_s13 + $0x18] sm:$0xff] }
 0x865   : > { %3328 = vmatprep.subr.bf16.mxu0 %v2693_v43 }
 0x868   : > { %3329 = vmatpush3.bf16.msra.mxu0 %v2693_v43  ;;  %v2697_v43 = vld [vmem:[%s4375_s13 + $0x10] sm:$0xff] }
 0x86b   : > { %3331 = vmatmul.mubr.msk.bf16.vlgmr.msra.gmra.mxu0 %vm1750_vm12, %v3425_v46 }
 0x86c   : > { %3334 = vmatprep.mubr.msk.bf16.mxu0 %vm1750_vm12, %v3426_v12 }
 0x873   : > { %3335 = vmatmul.mubr.msk.bf16.gmra.mxu0 %vm1750_vm12, %v3427_v13 }
 0x874   : > { %3338 = vmatprep.mubr.msk.bf16.mxu0 %vm1750_vm12, %v3428_v14  ;;  %v2696_v14 = vld [vmem:[%s4375_s13 + $0x8] sm:$0xff] }
 0x87b   : > { %3339 = vmatmul.mubr.msk.bf16.gmra.mxu0 %vm1750_vm12, %v3429_v15 }
 0x87c   : > { %3342 = vmatprep.mubr.msk.bf16.mxu0 %vm1750_vm12, %v3430_v61 }
 0x883   : > { %3343 = vmatmul.mubr.msk.bf16.gmra.mxu0 %vm1750_vm12, %v3431_v16  ;;  %v2695_v16 = vld [vmem:[%s4375_s13] sm:$0xff] }
 0x92b   : > { %v4280_v17 = vpop.f32.mrf.mxu0 }
 0x92c   : > { %v2818_v15 = vadd.f32 %v4280_v17, %v2697_v43 }
 0x92d   : > { %v4282_v18 = vpop.f32.mrf.mxu0 }
 0x92f   : > { %v3333_v19 = vpop.f32.mrf.mxu0 }
 0x930   : > { %v2821_v46 = vadd.f32 %v3333_v19, %v2698_v11 }
 0x931   : > { %v4284_v20 = vpop.f32.mrf.mxu0 }
 0x932   : > { %v2813_v19 = vadd.f32 %v4284_v20, %v2696_v14 }
 0x933   : > { %v3336_v21 = vpop.f32.mrf.mxu0 }
 0x934   : > { %v2834_v31 = vadd.f32 %v3336_v21, %v2701_v62  ;;  %v2875_v21 = vmax.f32 %v2821_v46, 0.0 }
 0x935   : > { %v2825_v22 = vpop.f32.mrf.mxu0 }
 0x936   : > { %v2878_v9 = vmax.f32 %v2834_v31, 0.0  ;;  %v2826_v40 = vadd.f32 %v2825_v22, %v2699_v59 }
 0x937   : > { %v3337_v23 = vpop.f32.mrf.mxu0 }
 0x938   : > { %v2837_v1 = vadd.f32 %v3337_v23, %v2702_v57  ;;  %v2876_v61 = vmax.f32 %v2826_v40, 0.0  ;;  %v2874_v23 = vmax.f32 %v2818_v15, 0.0 }
 0x939   : > { %v2828_v24 = vpop.f32.mrf.mxu0 }
 0x93a   : > { %v2879_v7 = vmax.f32 %v2837_v1, 0.0  ;;  %v2829_v8 = vadd.f32 %v2828_v24, %v2700_v42  ;;  %v2810_v24 = vadd.f32 %v4282_v18, %v2695_v16  ;;  %v2891_v17 = vpack.c.bf16 %v2875_v21, %v2874_v23  ;;  %v2898_v18 = vld [vmem:[%s4377_s15] sm:$0xff] }
 0x93b   : > { %v3340_v25 = vpop.f32.mrf.mxu0 }
 0x93c   : > { %v2850_v51 = vadd.f32 %v3340_v25, %v2705_v44  ;;  %v2893_v12 = vpack.c.bf16 %v2879_v7, %v2878_v9  ;;  %v2877_v13 = vmax.f32 %v2829_v8, 0.0  ;;  %v2873_v25 = vmax.f32 %v2813_v19, 0.0 }
 0x93d   : > { %v2841_v26 = vpop.f32.mrf.mxu0 }
 0x93e   : > { %v2882_v58 = vmax.f32 %v2850_v51, 0.0  ;;  %v2842_v60 = vadd.f32 %v2841_v26, %v2703_v53  ;;  %v2892_v22 = vpack.c.bf16 %v2877_v13, %v2876_v61  ;;  %v2872_v26 = vmax.f32 %v2810_v24, 0.0 }
 0x93f   : > { %v3341_v63 = vpop.f32.mrf.mxu0 }
 0x940   : > { %v2853_v47 = vadd.f32 %v3341_v63, %v2706_v38  ;;  %v2880_v3 = vmax.f32 %v2842_v60, 0.0  ;;  %v2890_v63 = vpack.c.bf16 %v2873_v25, %v2872_v26 }
 0x941   : > { %v2844_v27 = vpop.f32.mrf.mxu0 }
 0x942   : > { %v2883_v54 = vmax.f32 %v2853_v47, 0.0  ;;  %v2845_v55 = vadd.f32 %v2844_v27, %v2704_v50  ;;  %v3432_v27 = vld [vmem:[%s4376_s14] sm:$0x1f]  }
 0x943   : > { %v3344_v29 = vpop.f32.mrf.mxu0 }
 0x944   : > { %v2866_v30 = vadd.f32 %v3344_v29, %v2709_v28  ;;  %v2895_v4 = vpack.c.bf16 %v2883_v54, %v2882_v58  ;;  %v2881_v41 = vmax.f32 %v2845_v55, 0.0  ;;  %v2899_v29 = vld [vmem:[%s4377_s15 + $0x8] sm:$0x3] }
 0x945   : > { %v2857_v33 = vpop.f32.mrf.mxu0 }
 0x946   : > { %v2886_v2 = vmax.f32 %v2866_v30, 0.0  ;;  %v2858_v6 = vadd.f32 %v2857_v33, %v2707_v34  ;;  %v2894_v10 = vpack.c.bf16 %v2881_v41, %v2880_v3 }
 0x947   : > { %v3345_v35 = vpop.f32.mrf.mxu0 }
 0x948   : > { %v2869_v37 = vadd.f32 %v3345_v35, %v2710_v0  ;;  %v2884_v52 = vmax.f32 %v2858_v6, 0.0 }
 0x949   : > { %v2860_v39 = vpop.f32.mrf.mxu0 }
 0x94a   : > { %v2887_v5 = vmax.f32 %v2869_v37, 0.0  ;;  %v2861_v45 = vadd.f32 %v2860_v39, %v2708_v36 }
 0x94c   : > { %v2897_v48 = vpack.c.bf16 %v2887_v5, %v2886_v2  ;;  %v2885_v49 = vmax.f32 %v2861_v45, 0.0 }
 0x94e   : > { %3347 = vmatpush3.bf16.msra.mxu1 %v2897_v48  ;;  %v2896_v56 = vpack.c.bf16 %v2885_v49, %v2884_v52 }
 0x94f   : > { %3348 = vmatprep.subr.bf16.mxu1 %v3459_v32 }
 0x952   : > { %3349 = vmatpush3.bf16.msra.mxu1 %v2896_v56 }
 0x953   : > { %3350 = vmatprep.subr.bf16.mxu1 %v3459_v32 }
 0x956   : > { %3351 = vmatpush3.bf16.msra.mxu1 %v2895_v4 }
 0x957   : > { %3352 = vmatprep.subr.bf16.mxu1 %v3459_v32 }
 0x95a   : > { %3353 = vmatpush3.bf16.msra.mxu1 %v2894_v10 }
 0x95b   : > { %3354 = vmatprep.subr.bf16.mxu1 %v3459_v32 }
 0x95e   : > { %3355 = vmatpush3.bf16.msra.mxu1 %v2893_v12 }
 0x95f   : > { %3356 = vmatprep.subr.bf16.mxu1 %v3459_v32 }
 0x962   : > { %3357 = vmatpush3.bf16.msra.mxu1 %v2892_v22 }
 0x963   : > { %3358 = vmatprep.subr.bf16.mxu1 %v3459_v32 }
 0x966   : > { %3359 = vmatpush3.bf16.msra.mxu1 %v2891_v17 }
 0x967   : > { %3360 = vmatprep.subr.bf16.mxu1 %v3459_v32 }
 0x96a   : > { %3361 = vmatpush3.bf16.msra.mxu1 %v2890_v63 }
 0x96d   : > { %3363 = vmatmul.mubr.bf16.vlgmr.msra.gmra.mxu1 %v3432_v27 }
 0xa2d   : > { %v2940_v20 = vpop.f32.mrf.mxu1 }
 0xa2e   : > { %v2941_v32 = vadd.f32 %v2940_v20, %v2898_v18 }
 0xa2f   : > { %v3364_v28 = vpop.f32.mrf.mxu1 }
 0xa30   : > { %2947 = vst.msk [vmem:[%s523_s28] sm:$0xff] %vm721_vm2, %v2941_v32 }
 0xa31   : > { %v2943_v33 = vpop.f32.mrf.mxu1 }
 0xa32   : > { %v2944_v0 = vadd.f32 %v2943_v33, %v2899_v29 }
 0xa33   : > { %v3365_v30 = vpop.f32.mrf.mxu1 }
 0xa34   : > { %2949 = vst.msk [vmem:[%s523_s28 + $0x8] sm:$0x3] %vm2948_vm7, %v2944_v0 }
 0xa35 PF: > { %s26_s21 = sadd.s32 1, %s3455_s21  }
 0xa36   : > { %p23_p5 = scmp.ge.s32.totalorder %s26_s21, 4  }
 0xa38   :  { %25 = sbr.rel (!%p23_p5) target bundleno = 2 (0x2), region = 128 }

</bundles_post_ra>
